<compile_context>
chip_gen: v7x
topology: tpu7x:2x2x1
jax: 0.10.0
libtpu: 0.0.40
codegen_flags: <defaults>
</compile_context>

<pallas_src>
import jax
import jax.numpy as jnp
from jax.experimental import pallas as pl
from jax.experimental.pallas import tpu as pltpu

# ---------------- tiny CLIP-text config ----------------
B, S, D = 2, 8, 32      # batch, seq_len, hidden
H = 4                   # attention heads
DH = D // H             # head dim
M = 4 * D               # MLP intermediate (= 128, one lane tile)
P = 32                  # text projection dim
V = 64                  # vocab size
L = 2                   # transformer layers
EPS = 1e-5
NEG = -1e9              # stand-in for torch.finfo(dtype).min
WDT = jnp.bfloat16      # MXU-operand dtype (f32 accumulation)


def _layer_norm(x, g, b):
    mu = jnp.mean(x, axis=-1, keepdims=True)
    var = jnp.mean(jnp.square(x - mu), axis=-1, keepdims=True)
    return (x - mu) * jax.lax.rsqrt(var + EPS) * g + b


# ---------------- fused Pallas kernel (one grid step per batch row) ---------
def clip_text_kernel(ids_ref, eos_ref,                       # scalar prefetch (SMEM)
                     amask_ref, tokemb_ref, posemb_ref, vecs_ref,
                     qkvw_ref, ow_ref, f1w_ref, f2w_ref, projw_ref,
                     feats_ref,                              # output
                     x_scratch):                             # VMEM scratch (S, D)
    b = pl.program_id(0)

    # ---- token + position embedding (in-kernel gather via SMEM ids) ----
    for s in range(S):                                       # static unroll (S=8)
        tok = ids_ref[b, s]
        x_scratch[pl.ds(s, 1), :] = tokemb_ref[pl.ds(tok, 1), :]
    x = x_scratch[...] + posemb_ref[...]                     # (S, D) f32

    # ---- additive attention bias: causal + key padding, built in-kernel ----
    am = amask_ref[0, 0, :]                                  # (S,) 1.0=keep, 0.0=pad
    ri = jax.lax.broadcasted_iota(jnp.int32, (S, S), 0)
    ci = jax.lax.broadcasted_iota(jnp.int32, (S, S), 1)
    keep = jnp.logical_and(ri >= ci, (am > 0.5)[None, :])
    bias = jnp.where(keep, 0.0, NEG)                         # (S, S) f32

    for l in range(L):                                       # static unroll (L=2)
        vl = vecs_ref[l]                                     # (8, M) packed vectors
        ln1g, ln1b = vl[0, :D], vl[1, :D]
        qkvb = vl[2, :3 * D]
        ob = vl[3, :D]
        ln2g, ln2b = vl[4, :D], vl[5, :D]
        f1b = vl[6, :]
        f2b = vl[7, :D]

        # ---- self-attention block (pre-LN) ----
        h = _layer_norm(x, ln1g, ln1b)                       # (S, D) f32
        qkv = jnp.dot(h.astype(WDT), qkvw_ref[l],
                      preferred_element_type=jnp.float32) + qkvb   # (S, 3D) f32

        # head split using only sublane-axis reshapes + small transposes:
        #   (S, 3D) -T-> (3D, S) -> (3H, DH, S) -T(0,2,1)-> (3H, S, DH)
        qkv_t = jnp.transpose(qkv).reshape(3 * H, DH, S)
        qkv_t = jnp.transpose(qkv_t, (0, 2, 1))              # (3H, S, DH)
        qh, kh, vh = qkv_t[:H], qkv_t[H:2 * H], qkv_t[2 * H:]

        # head-batched attention (1/sqrt(DH) already folded into Q weights)
        s_hqk = jnp.einsum('hqd,hkd->hqk', qh, kh,
                           preferred_element_type=jnp.float32)
        s_hqk = s_hqk + bias[None, :, :]                     # (H, S, S)
        p = jnp.exp(s_hqk)          # masked logits <= -1e9 underflow to exactly 0
        p = p * pl.reciprocal(jnp.sum(p, axis=-1, keepdims=True) + 1e-6,
                              approx=True)
        ctx = jnp.einsum('hqk,hkd->hqd', p, vh,
                         preferred_element_type=jnp.float32)  # (H, S, DH)

        # merge heads: (H, S, DH) -T(0,2,1)-> (H, DH, S) -> (D, S) -T-> (S, D)
        ctx = jnp.transpose(jnp.transpose(ctx, (0, 2, 1)).reshape(D, S))
        attn = jnp.dot(ctx.astype(WDT), ow_ref[l],
                       preferred_element_type=jnp.float32) + ob
        x = x + attn

        # ---- MLP block (QuickGELU) ----
        h2 = _layer_norm(x, ln2g, ln2b)
        h2 = jnp.dot(h2.astype(WDT), f1w_ref[l],
                     preferred_element_type=jnp.float32) + f1b      # (S, M)
        h2 = h2 * jax.nn.sigmoid(1.702 * h2)
        h2 = jnp.dot(h2.astype(WDT), f2w_ref[l],
                     preferred_element_type=jnp.float32) + f2b      # (S, D)
        x = x + h2

    # ---- EOS pooling + final LayerNorm + text projection ----
    # LN is per-token, so pooling first and LN'ing only the pooled row is
    # exactly equivalent to ln_final(x)[eos].
    lnfg, lnfb = vecs_ref[L, 0, :D], vecs_ref[L, 1, :D]
    eos = eos_ref[b]
    sel = jax.lax.broadcasted_iota(jnp.int32, (S, 1), 0) == eos      # (S, 1)
    pooled = jnp.sum(jnp.where(sel, x, 0.0), axis=0, keepdims=True)  # (1, D)
    pooled = _layer_norm(pooled, lnfg, lnfb)
    feats = jnp.dot(pooled.astype(WDT), projw_ref[...],
                    preferred_element_type=jnp.float32)              # (1, P)
    feats_ref[...] = feats.reshape(1, 1, P)


# ---------------- parameter init (synthetic, deterministic) ----------------
# TODO(synk): pretrained CLIP checkpoint weights / HF tokenizer are not
# reproducible in-script; weights are synthetic with identical structure.
def init_params(key):
    def nrm(k, shape, scale=0.02):
        return (scale * jax.random.normal(k, shape)).astype(jnp.float32)

    def pad(v):  # pad a vector to width M so all small vecs share one array
        return jnp.pad(v, (0, M - v.shape[0]))

    keys = jax.random.split(key, 3 + L)
    attn_scale = DH ** -0.5

    qkvw, ow, f1w, f2w, vecs = [], [], [], [], []
    for l in range(L):
        lk = jax.random.split(keys[3 + l], 6)
        qw = nrm(lk[0], (D, D)) * attn_scale       # fold 1/sqrt(DH) into Q weights
        kw = nrm(lk[1], (D, D))
        vw = nrm(lk[2], (D, D))
        qkvw.append(jnp.concatenate([qw, kw, vw], axis=1))    # (D, 3D)
        ow.append(nrm(lk[3], (D, D)))
        f1w.append(nrm(lk[4], (D, M)))
        f2w.append(nrm(lk[5], (M, D)))
        vecs.append(jnp.stack([
            pad(jnp.ones((D,), jnp.float32)),       # ln1 gamma
            pad(jnp.zeros((D,), jnp.float32)),      # ln1 beta
            pad(jnp.zeros((3 * D,), jnp.float32)),  # qkv bias (scaled q bias is 0)
            pad(jnp.zeros((D,), jnp.float32)),      # out-proj bias
            pad(jnp.ones((D,), jnp.float32)),       # ln2 gamma
            pad(jnp.zeros((D,), jnp.float32)),      # ln2 beta
            jnp.zeros((M,), jnp.float32),           # fc1 bias
            pad(jnp.zeros((D,), jnp.float32)),      # fc2 bias
        ]))
    # final LayerNorm packed into an extra "layer" slot (rows 0, 1)
    vecs.append(jnp.stack([pad(jnp.ones((D,), jnp.float32)),
                           pad(jnp.zeros((D,), jnp.float32))]
                          + [jnp.zeros((M,), jnp.float32)] * 6))

    return {
        "token_embedding": nrm(keys[0], (V, D)),
        "position_embedding": nrm(keys[1], (S, D)),
        "text_projection": nrm(keys[2], (D, P)).astype(WDT),   # no bias in CLIP
        "vecs": jnp.stack(vecs),                               # (L+1, 8, M) f32
        "qkvw": jnp.stack(qkvw).astype(WDT),                   # (L, D, 3D)
        "ow": jnp.stack(ow).astype(WDT),                       # (L, D, D)
        "f1w": jnp.stack(f1w).astype(WDT),                     # (L, D, M)
        "f2w": jnp.stack(f2w).astype(WDT),                     # (L, M, D)
    }


# ---------------- full forward (== get_text_features) ----------------
@jax.jit
def clip_get_text_features(input_ids, attention_mask, params):
    # CLIP EOS pooling: argmax of input_ids (EOT token has the max id).
    # TODO(synk): with a real tokenizer use the (input_ids == eos_token_id)
    # position instead of argmax.
    eos_idx = jnp.argmax(input_ids, axis=-1).astype(jnp.int32)        # (B,)
    amask3 = attention_mask.astype(jnp.float32).reshape(B, 1, S)

    grid_spec = pltpu.PrefetchScalarGridSpec(
        num_scalar_prefetch=2,                 # input_ids, eos_idx -> SMEM
        grid=(B,),
        in_specs=[
            pl.BlockSpec((1, 1, S), lambda b, ids, eos: (b, 0, 0)),        # mask
            pl.BlockSpec((V, D), lambda b, ids, eos: (0, 0)),              # tok emb
            pl.BlockSpec((S, D), lambda b, ids, eos: (0, 0)),              # pos emb
            pl.BlockSpec((L + 1, 8, M), lambda b, ids, eos: (0, 0, 0)),    # packed vecs
            pl.BlockSpec((L, D, 3 * D), lambda b, ids, eos: (0, 0, 0)),    # qkv W
            pl.BlockSpec((L, D, D), lambda b, ids, eos: (0, 0, 0)),        # out W
            pl.BlockSpec((L, D, M), lambda b, ids, eos: (0, 0, 0)),        # fc1 W
            pl.BlockSpec((L, M, D), lambda b, ids, eos: (0, 0, 0)),        # fc2 W
            pl.BlockSpec((D, P), lambda b, ids, eos: (0, 0)),              # text proj
        ],
        out_specs=pl.BlockSpec((1, 1, P), lambda b, ids, eos: (b, 0, 0)),
        scratch_shapes=[pltpu.VMEM((S, D), jnp.float32)],
    )

    feats = pl.pallas_call(
        clip_text_kernel,
        out_shape=jax.ShapeDtypeStruct((B, 1, P), jnp.float32),
        grid_spec=grid_spec,
        compiler_params=pltpu.CompilerParams(
            dimension_semantics=("parallel",)),    # 2-way TC sharding on v7x
    )(input_ids.astype(jnp.int32), eos_idx, amask3,
      params["token_embedding"], params["position_embedding"], params["vecs"],
      params["qkvw"], params["ow"], params["f1w"], params["f2w"],
      params["text_projection"])

    return feats.reshape(B, P)


if __name__ == "__main__":
    key = jax.random.PRNGKey(0)
    kp, ki = jax.random.split(key)
    params = init_params(kp)

    input_ids = jax.random.randint(ki, (B, S), 0, V, dtype=jnp.int32)
    attention_mask = jnp.array([[1] * S,
                                [1] * (S - 2) + [0, 0]], dtype=jnp.int32)

    feats = clip_get_text_features(input_ids, attention_mask, params)
    feats = jax.block_until_ready(feats)
    assert feats.shape == (B, P) and feats.dtype == jnp.float32
    assert bool(jnp.all(jnp.isfinite(feats)))
    print("KERNEL_OK")
</pallas_src>

<mosaic_0001>
module attributes {stable_mosaic.version = 11 : i64} {
  func.func @clip_text_kernel(%arg0: i32, %arg1: memref<2x8xi32, #tpu.memory_space<smem>>, %arg2: memref<2xi32, #tpu.memory_space<smem>>, %arg3: memref<1x1x8xf32, #tpu.memory_space<vmem>>, %arg4: memref<64x32xf32, #tpu.memory_space<vmem>>, %arg5: memref<8x32xf32, #tpu.memory_space<vmem>>, %arg6: memref<3x8x128xf32, #tpu.memory_space<vmem>>, %arg7: memref<2x32x96xbf16, #tpu.memory_space<vmem>>, %arg8: memref<2x32x32xbf16, #tpu.memory_space<vmem>>, %arg9: memref<2x32x128xbf16, #tpu.memory_space<vmem>>, %arg10: memref<2x128x32xbf16, #tpu.memory_space<vmem>>, %arg11: memref<32x32xbf16, #tpu.memory_space<vmem>>, %arg12: memref<1x1x32xf32, #tpu.memory_space<vmem>>, %arg13: memref<8x32xf32, #tpu.memory_space<vmem>>) attributes {dimension_semantics = [#tpu.dimension_semantics<parallel>], iteration_bounds = array<i64: 2>, scalar_prefetch = 2 : i64, scratch_operands = 1 : i64, tpu.core_type = #tpu.core_type<tc>, window_params = [{transform_indices = @transform_0, window_bounds = array<i64: 1, 1, 8>}, {pipeline_mode = #tpu.pipeline_mode<synchronous>, transform_indices = @transform_1, window_bounds = array<i64: 64, 32>}, {pipeline_mode = #tpu.pipeline_mode<synchronous>, transform_indices = @transform_2, window_bounds = array<i64: 8, 32>}, {pipeline_mode = #tpu.pipeline_mode<synchronous>, transform_indices = @transform_3, window_bounds = array<i64: 3, 8, 128>}, {pipeline_mode = #tpu.pipeline_mode<synchronous>, transform_indices = @transform_4, window_bounds = array<i64: 2, 32, 96>}, {pipeline_mode = #tpu.pipeline_mode<synchronous>, transform_indices = @transform_5, window_bounds = array<i64: 2, 32, 32>}, {pipeline_mode = #tpu.pipeline_mode<synchronous>, transform_indices = @transform_6, window_bounds = array<i64: 2, 32, 128>}, {pipeline_mode = #tpu.pipeline_mode<synchronous>, transform_indices = @transform_7, window_bounds = array<i64: 2, 128, 32>}, {pipeline_mode = #tpu.pipeline_mode<synchronous>, transform_indices = @transform_8, window_bounds = array<i64: 32, 32>}, {transform_indices = @transform_9, window_bounds = array<i64: 1, 1, 32>}]} {
    %0 = arith.index_cast %arg0 : i32 to index
    %c0 = arith.constant 0 : index
    %1 = memref.load %arg1[%0, %c0] : memref<2x8xi32, #tpu.memory_space<smem>>
    %2 = arith.index_cast %1 : i32 to index
    %c0_0 = arith.constant 0 : index
    %3 = vector.load %arg4[%2, %c0_0] : memref<64x32xf32, #tpu.memory_space<vmem>>, vector<1x32xf32>
    %c0_1 = arith.constant 0 : index
    %c0_2 = arith.constant 0 : index
    %4 = vector.load %arg13[%c0_1, %c0_2] : memref<8x32xf32, #tpu.memory_space<vmem>>, vector<1x32xf32>
    tpu.vector_store %arg13[%c0_1, %c0_2], %3 {strides = array<i32>} : memref<8x32xf32, #tpu.memory_space<vmem>>, vector<1x32xf32>,
    %5 = arith.index_cast %arg0 : i32 to index
    %c1 = arith.constant 1 : index
    %6 = memref.load %arg1[%5, %c1] : memref<2x8xi32, #tpu.memory_space<smem>>
    %7 = arith.index_cast %6 : i32 to index
    %c0_3 = arith.constant 0 : index
    %8 = vector.load %arg4[%7, %c0_3] : memref<64x32xf32, #tpu.memory_space<vmem>>, vector<1x32xf32>
    %c1_4 = arith.constant 1 : index
    %c0_5 = arith.constant 0 : index
    %9 = vector.load %arg13[%c1_4, %c0_5] : memref<8x32xf32, #tpu.memory_space<vmem>>, vector<1x32xf32>
    tpu.vector_store %arg13[%c1_4, %c0_5], %8 {strides = array<i32>} : memref<8x32xf32, #tpu.memory_space<vmem>>, vector<1x32xf32>,
    %10 = arith.index_cast %arg0 : i32 to index
    %c2 = arith.constant 2 : index
    %11 = memref.load %arg1[%10, %c2] : memref<2x8xi32, #tpu.memory_space<smem>>
    %12 = arith.index_cast %11 : i32 to index
    %c0_6 = arith.constant 0 : index
    %13 = vector.load %arg4[%12, %c0_6] : memref<64x32xf32, #tpu.memory_space<vmem>>, vector<1x32xf32>
    %c2_7 = arith.constant 2 : index
    %c0_8 = arith.constant 0 : index
    %14 = vector.load %arg13[%c2_7, %c0_8] : memref<8x32xf32, #tpu.memory_space<vmem>>, vector<1x32xf32>
    tpu.vector_store %arg13[%c2_7, %c0_8], %13 {strides = array<i32>} : memref<8x32xf32, #tpu.memory_space<vmem>>, vector<1x32xf32>,
    %15 = arith.index_cast %arg0 : i32 to index
    %c3 = arith.constant 3 : index
    %16 = memref.load %arg1[%15, %c3] : memref<2x8xi32, #tpu.memory_space<smem>>
    %17 = arith.index_cast %16 : i32 to index
    %c0_9 = arith.constant 0 : index
    %18 = vector.load %arg4[%17, %c0_9] : memref<64x32xf32, #tpu.memory_space<vmem>>, vector<1x32xf32>
    %c3_10 = arith.constant 3 : index
    %c0_11 = arith.constant 0 : index
    %19 = vector.load %arg13[%c3_10, %c0_11] : memref<8x32xf32, #tpu.memory_space<vmem>>, vector<1x32xf32>
    tpu.vector_store %arg13[%c3_10, %c0_11], %18 {strides = array<i32>} : memref<8x32xf32, #tpu.memory_space<vmem>>, vector<1x32xf32>,
    %20 = arith.index_cast %arg0 : i32 to index
    %c4 = arith.constant 4 : index
    %21 = memref.load %arg1[%20, %c4] : memref<2x8xi32, #tpu.memory_space<smem>>
    %22 = arith.index_cast %21 : i32 to index
    %c0_12 = arith.constant 0 : index
    %23 = vector.load %arg4[%22, %c0_12] : memref<64x32xf32, #tpu.memory_space<vmem>>, vector<1x32xf32>
    %c4_13 = arith.constant 4 : index
    %c0_14 = arith.constant 0 : index
    %24 = vector.load %arg13[%c4_13, %c0_14] : memref<8x32xf32, #tpu.memory_space<vmem>>, vector<1x32xf32>
    tpu.vector_store %arg13[%c4_13, %c0_14], %23 {strides = array<i32>} : memref<8x32xf32, #tpu.memory_space<vmem>>, vector<1x32xf32>,
    %25 = arith.index_cast %arg0 : i32 to index
    %c5 = arith.constant 5 : index
    %26 = memref.load %arg1[%25, %c5] : memref<2x8xi32, #tpu.memory_space<smem>>
    %27 = arith.index_cast %26 : i32 to index
    %c0_15 = arith.constant 0 : index
    %28 = vector.load %arg4[%27, %c0_15] : memref<64x32xf32, #tpu.memory_space<vmem>>, vector<1x32xf32>
    %c5_16 = arith.constant 5 : index
    %c0_17 = arith.constant 0 : index
    %29 = vector.load %arg13[%c5_16, %c0_17] : memref<8x32xf32, #tpu.memory_space<vmem>>, vector<1x32xf32>
    tpu.vector_store %arg13[%c5_16, %c0_17], %28 {strides = array<i32>} : memref<8x32xf32, #tpu.memory_space<vmem>>, vector<1x32xf32>,
    %30 = arith.index_cast %arg0 : i32 to index
    %c6 = arith.constant 6 : index
    %31 = memref.load %arg1[%30, %c6] : memref<2x8xi32, #tpu.memory_space<smem>>
    %32 = arith.index_cast %31 : i32 to index
    %c0_18 = arith.constant 0 : index
    %33 = vector.load %arg4[%32, %c0_18] : memref<64x32xf32, #tpu.memory_space<vmem>>, vector<1x32xf32>
    %c6_19 = arith.constant 6 : index
    %c0_20 = arith.constant 0 : index
    %34 = vector.load %arg13[%c6_19, %c0_20] : memref<8x32xf32, #tpu.memory_space<vmem>>, vector<1x32xf32>
    tpu.vector_store %arg13[%c6_19, %c0_20], %33 {strides = array<i32>} : memref<8x32xf32, #tpu.memory_space<vmem>>, vector<1x32xf32>,
    %35 = arith.index_cast %arg0 : i32 to index
    %c7 = arith.constant 7 : index
    %36 = memref.load %arg1[%35, %c7] : memref<2x8xi32, #tpu.memory_space<smem>>
    %37 = arith.index_cast %36 : i32 to index
    %c0_21 = arith.constant 0 : index
    %38 = vector.load %arg4[%37, %c0_21] : memref<64x32xf32, #tpu.memory_space<vmem>>, vector<1x32xf32>
    %c7_22 = arith.constant 7 : index
    %c0_23 = arith.constant 0 : index
    %39 = vector.load %arg13[%c7_22, %c0_23] : memref<8x32xf32, #tpu.memory_space<vmem>>, vector<1x32xf32>
    tpu.vector_store %arg13[%c7_22, %c0_23], %38 {strides = array<i32>} : memref<8x32xf32, #tpu.memory_space<vmem>>, vector<1x32xf32>,
    %c0_24 = arith.constant 0 : index
    %c0_25 = arith.constant 0 : index
    %40 = vector.load %arg13[%c0_24, %c0_25] : memref<8x32xf32, #tpu.memory_space<vmem>>, vector<8x32xf32>
    %c0_26 = arith.constant 0 : index
    %c0_27 = arith.constant 0 : index
    %41 = vector.load %arg5[%c0_26, %c0_27] : memref<8x32xf32, #tpu.memory_space<vmem>>, vector<8x32xf32>
    %42 = arith.addf %40, %41 : vector<8x32xf32>
    %c0_28 = arith.constant 0 : index
    %c0_29 = arith.constant 0 : index
    %c0_30 = arith.constant 0 : index
    %43 = vector.load %arg3[%c0_28, %c0_29, %c0_30] : memref<1x1x8xf32, #tpu.memory_space<vmem>>, vector<1x1x8xf32>
    %44 = vector.shape_cast %43 : vector<1x1x8xf32> to vector<8xf32>
    %45 = tpu.iota {dimensions = array<i32: 0>} : vector<8x8xi32>
    %46 = tpu.iota {dimensions = array<i32: 1>} : vector<8x8xi32>
    %47 = arith.cmpi sge, %45, %46 : vector<8x8xi32>
    %cst = arith.constant 5.000000e-01 : f32
    %48 = vector.broadcast %cst : f32 to vector<8xf32>
    %49 = arith.cmpf ogt, %44, %48 : vector<8xf32>
    %50 = vector.shape_cast %49 : vector<8xi1> to vector<1x8xi1>
    %51 = vector.broadcast %50 : vector<1x8xi1> to vector<8x8xi1>
    %52 = arith.andi %47, %51 : vector<8x8xi1>
    %cst_31 = arith.constant 0.000000e+00 : f32
    %cst_32 = arith.constant -1.000000e+09 : f32
    %53 = vector.broadcast %cst_31 : f32 to vector<8x8xf32>
    %54 = vector.broadcast %cst_32 : f32 to vector<8x8xf32>
    %55 = arith.select %52, %53, %54 : vector<8x8xi1>, vector<8x8xf32>
    %c0_33 = arith.constant 0 : index
    %c0_34 = arith.constant 0 : index
    %c0_35 = arith.constant 0 : index
    %56 = vector.load %arg6[%c0_33, %c0_34, %c0_35] : memref<3x8x128xf32, #tpu.memory_space<vmem>>, vector<1x8x128xf32>
    %57 = vector.shape_cast %56 : vector<1x8x128xf32> to vector<8x128xf32>
    %58 = vector.extract_strided_slice %57 {offsets = [0, 0], sizes = [1, 32], strides = [1, 1]} : vector<8x128xf32> to vector<1x32xf32>
    %59 = vector.shape_cast %58 : vector<1x32xf32> to vector<32xf32>
    %60 = vector.extract_strided_slice %57 {offsets = [1, 0], sizes = [1, 32], strides = [1, 1]} : vector<8x128xf32> to vector<1x32xf32>
    %61 = vector.shape_cast %60 : vector<1x32xf32> to vector<32xf32>
    %62 = vector.extract_strided_slice %57 {offsets = [2, 0], sizes = [1, 96], strides = [1, 1]} : vector<8x128xf32> to vector<1x96xf32>
    %63 = vector.shape_cast %62 : vector<1x96xf32> to vector<96xf32>
    %64 = vector.extract_strided_slice %57 {offsets = [3, 0], sizes = [1, 32], strides = [1, 1]} : vector<8x128xf32> to vector<1x32xf32>
    %65 = vector.shape_cast %64 : vector<1x32xf32> to vector<32xf32>
    %66 = vector.extract_strided_slice %57 {offsets = [4, 0], sizes = [1, 32], strides = [1, 1]} : vector<8x128xf32> to vector<1x32xf32>
    %67 = vector.shape_cast %66 : vector<1x32xf32> to vector<32xf32>
    %68 = vector.extract_strided_slice %57 {offsets = [5, 0], sizes = [1, 32], strides = [1, 1]} : vector<8x128xf32> to vector<1x32xf32>
    %69 = vector.shape_cast %68 : vector<1x32xf32> to vector<32xf32>
    %70 = vector.extract_strided_slice %57 {offsets = [6, 0], sizes = [1, 128], strides = [1, 1]} : vector<8x128xf32> to vector<1x128xf32>
    %71 = vector.shape_cast %70 : vector<1x128xf32> to vector<128xf32>
    %72 = vector.extract_strided_slice %57 {offsets = [7, 0], sizes = [1, 32], strides = [1, 1]} : vector<8x128xf32> to vector<1x32xf32>
    %73 = vector.shape_cast %72 : vector<1x32xf32> to vector<32xf32>
    %cst_36 = arith.constant dense<0.000000e+00> : vector<8xf32>
    %74 = vector.multi_reduction <add>, %42, %cst_36 [1] : vector<8x32xf32> to vector<8xf32>
    %75 = vector.shape_cast %74 : vector<8xf32> to vector<8x1xf32>
    %cst_37 = arith.constant 3.200000e+01 : f32
    %76 = vector.broadcast %cst_37 : f32 to vector<8x1xf32>
    %77 = arith.divf %75, %76 : vector<8x1xf32>
    %78 = vector.broadcast %77 : vector<8x1xf32> to vector<8x32xf32>
    %79 = arith.subf %42, %78 : vector<8x32xf32>
    %80 = arith.mulf %79, %79 : vector<8x32xf32>
    %cst_38 = arith.constant dense<0.000000e+00> : vector<8xf32>
    %81 = vector.multi_reduction <add>, %80, %cst_38 [1] : vector<8x32xf32> to vector<8xf32>
    %82 = vector.shape_cast %81 : vector<8xf32> to vector<8x1xf32>
    %cst_39 = arith.constant 3.200000e+01 : f32
    %83 = vector.broadcast %cst_39 : f32 to vector<8x1xf32>
    %84 = arith.divf %82, %83 : vector<8x1xf32>
    %85 = vector.broadcast %77 : vector<8x1xf32> to vector<8x32xf32>
    %86 = arith.subf %42, %85 : vector<8x32xf32>
    %cst_40 = arith.constant 9.99999974E-6 : f32
    %87 = vector.broadcast %cst_40 : f32 to vector<8x1xf32>
    %88 = arith.addf %84, %87 : vector<8x1xf32>
    %89 = math.rsqrt %88 : vector<8x1xf32>
    %90 = vector.broadcast %89 : vector<8x1xf32> to vector<8x32xf32>
    %91 = arith.mulf %86, %90 : vector<8x32xf32>
    %92 = vector.shape_cast %59 : vector<32xf32> to vector<1x32xf32>
    %93 = vector.broadcast %92 : vector<1x32xf32> to vector<8x32xf32>
    %94 = arith.mulf %91, %93 : vector<8x32xf32>
    %95 = vector.shape_cast %61 : vector<32xf32> to vector<1x32xf32>
    %96 = vector.broadcast %95 : vector<1x32xf32> to vector<8x32xf32>
    %97 = arith.addf %94, %96 : vector<8x32xf32>
    %98 = arith.truncf %97 : vector<8x32xf32> to vector<8x32xbf16>
    %c0_41 = arith.constant 0 : index
    %c0_42 = arith.constant 0 : index
    %c0_43 = arith.constant 0 : index
    %99 = vector.load %arg7[%c0_41, %c0_42, %c0_43] : memref<2x32x96xbf16, #tpu.memory_space<vmem>>, vector<1x32x96xbf16>
    %100 = vector.shape_cast %99 : vector<1x32x96xbf16> to vector<32x96xbf16>
    %cst_44 = arith.constant dense<0.000000e+00> : vector<8x96xf32>
    %101 = tpu.matmul %98, %100, %cst_44 {dimension_numbers = #tpu.dot_dimension_numbers<[1], [0], [0], [1], [0, 0, 1, 1], [], []>} : vector<8x32xbf16>, vector<32x96xbf16>, vector<8x96xf32> -> vector<8x96xf32>
    %102 = vector.shape_cast %63 : vector<96xf32> to vector<1x96xf32>
    %103 = vector.broadcast %102 : vector<1x96xf32> to vector<8x96xf32>
    %104 = arith.addf %101, %103 : vector<8x96xf32>
    %105 = tpu.transpose %104, [1, 0] : vector<8x96xf32> -> vector<96x8xf32>
    %106 = vector.shape_cast %105 : vector<96x8xf32> to vector<12x8x8xf32>
    %107 = tpu.transpose %106, [0, 2, 1] : vector<12x8x8xf32> -> vector<12x8x8xf32>
    %108 = vector.extract_strided_slice %107 {offsets = [0, 0, 0], sizes = [4, 8, 8], strides = [1, 1, 1]} : vector<12x8x8xf32> to vector<4x8x8xf32>
    %109 = vector.extract_strided_slice %107 {offsets = [4, 0, 0], sizes = [4, 8, 8], strides = [1, 1, 1]} : vector<12x8x8xf32> to vector<4x8x8xf32>
    %110 = vector.extract_strided_slice %107 {offsets = [8, 0, 0], sizes = [4, 8, 8], strides = [1, 1, 1]} : vector<12x8x8xf32> to vector<4x8x8xf32>
    "tpu.trace_start"() <{level = 10 : i32, message = "hqd,hkd->hqk"}> : () -> ()
    %cst_45 = arith.constant dense<0.000000e+00> : vector<4x8x8xf32>
    %111 = tpu.matmul %108, %109, %cst_45 {dimension_numbers = #tpu.dot_dimension_numbers<[2], [2], [1], [1], [0, 0, 0, 1, 1, 1], [0], [0]>} : vector<4x8x8xf32>, vector<4x8x8xf32>, vector<4x8x8xf32> -> vector<4x8x8xf32>
    "tpu.trace_stop"() : () -> ()
    %112 = vector.shape_cast %55 : vector<8x8xf32> to vector<1x8x8xf32>
    %113 = vector.broadcast %112 : vector<1x8x8xf32> to vector<4x8x8xf32>
    %114 = arith.addf %111, %113 : vector<4x8x8xf32>
    %115 = math.exp %114 : vector<4x8x8xf32>
    %cst_46 = arith.constant dense<0.000000e+00> : vector<4x8xf32>
    %116 = vector.multi_reduction <add>, %115, %cst_46 [2] : vector<4x8x8xf32> to vector<4x8xf32>
    %117 = vector.shape_cast %116 : vector<4x8xf32> to vector<4x8x1xf32>
    %cst_47 = arith.constant 9.99999997E-7 : f32
    %118 = vector.broadcast %cst_47 : f32 to vector<4x8x1xf32>
    %119 = arith.addf %117, %118 : vector<4x8x1xf32>
    %120 = tpu.reciprocal %119 {approx = true} : vector<4x8x1xf32> -> vector<4x8x1xf32>
    %121 = vector.broadcast %120 : vector<4x8x1xf32> to vector<4x8x8xf32>
    %122 = arith.mulf %115, %121 : vector<4x8x8xf32>
    "tpu.trace_start"() <{level = 10 : i32, message = "hqk,hkd->hqd"}> : () -> ()
    %cst_48 = arith.constant dense<0.000000e+00> : vector<4x8x8xf32>
    %123 = tpu.matmul %122, %110, %cst_48 {dimension_numbers = #tpu.dot_dimension_numbers<[2], [1], [1], [2], [0, 0, 0, 1, 1, 2], [0], [0]>} : vector<4x8x8xf32>, vector<4x8x8xf32>, vector<4x8x8xf32> -> vector<4x8x8xf32>
    "tpu.trace_stop"() : () -> ()
    %124 = tpu.transpose %123, [0, 2, 1] : vector<4x8x8xf32> -> vector<4x8x8xf32>
    %125 = vector.shape_cast %124 : vector<4x8x8xf32> to vector<32x8xf32>
    %126 = tpu.transpose %125, [1, 0] : vector<32x8xf32> -> vector<8x32xf32>
    %127 = arith.truncf %126 : vector<8x32xf32> to vector<8x32xbf16>
    %c0_49 = arith.constant 0 : index
    %c0_50 = arith.constant 0 : index
    %c0_51 = arith.constant 0 : index
    %128 = vector.load %arg8[%c0_49, %c0_50, %c0_51] : memref<2x32x32xbf16, #tpu.memory_space<vmem>>, vector<1x32x32xbf16>
    %129 = vector.shape_cast %128 : vector<1x32x32xbf16> to vector<32x32xbf16>
    %cst_52 = arith.constant dense<0.000000e+00> : vector<8x32xf32>
    %130 = tpu.matmul %127, %129, %cst_52 {dimension_numbers = #tpu.dot_dimension_numbers<[1], [0], [0], [1], [0, 0, 1, 1], [], []>} : vector<8x32xbf16>, vector<32x32xbf16>, vector<8x32xf32> -> vector<8x32xf32>
    %131 = vector.shape_cast %65 : vector<32xf32> to vector<1x32xf32>
    %132 = vector.broadcast %131 : vector<1x32xf32> to vector<8x32xf32>
    %133 = arith.addf %130, %132 : vector<8x32xf32>
    %134 = arith.addf %42, %133 : vector<8x32xf32>
    %cst_53 = arith.constant dense<0.000000e+00> : vector<8xf32>
    %135 = vector.multi_reduction <add>, %134, %cst_53 [1] : vector<8x32xf32> to vector<8xf32>
    %136 = vector.shape_cast %135 : vector<8xf32> to vector<8x1xf32>
    %cst_54 = arith.constant 3.200000e+01 : f32
    %137 = vector.broadcast %cst_54 : f32 to vector<8x1xf32>
    %138 = arith.divf %136, %137 : vector<8x1xf32>
    %139 = vector.broadcast %138 : vector<8x1xf32> to vector<8x32xf32>
    %140 = arith.subf %134, %139 : vector<8x32xf32>
    %141 = arith.mulf %140, %140 : vector<8x32xf32>
    %cst_55 = arith.constant dense<0.000000e+00> : vector<8xf32>
    %142 = vector.multi_reduction <add>, %141, %cst_55 [1] : vector<8x32xf32> to vector<8xf32>
    %143 = vector.shape_cast %142 : vector<8xf32> to vector<8x1xf32>
    %cst_56 = arith.constant 3.200000e+01 : f32
    %144 = vector.broadcast %cst_56 : f32 to vector<8x1xf32>
    %145 = arith.divf %143, %144 : vector<8x1xf32>
    %146 = vector.broadcast %138 : vector<8x1xf32> to vector<8x32xf32>
    %147 = arith.subf %134, %146 : vector<8x32xf32>
    %cst_57 = arith.constant 9.99999974E-6 : f32
    %148 = vector.broadcast %cst_57 : f32 to vector<8x1xf32>
    %149 = arith.addf %145, %148 : vector<8x1xf32>
    %150 = math.rsqrt %149 : vector<8x1xf32>
    %151 = vector.broadcast %150 : vector<8x1xf32> to vector<8x32xf32>
    %152 = arith.mulf %147, %151 : vector<8x32xf32>
    %153 = vector.shape_cast %67 : vector<32xf32> to vector<1x32xf32>
    %154 = vector.broadcast %153 : vector<1x32xf32> to vector<8x32xf32>
    %155 = arith.mulf %152, %154 : vector<8x32xf32>
    %156 = vector.shape_cast %69 : vector<32xf32> to vector<1x32xf32>
    %157 = vector.broadcast %156 : vector<1x32xf32> to vector<8x32xf32>
    %158 = arith.addf %155, %157 : vector<8x32xf32>
    %159 = arith.truncf %158 : vector<8x32xf32> to vector<8x32xbf16>
    %c0_58 = arith.constant 0 : index
    %c0_59 = arith.constant 0 : index
    %c0_60 = arith.constant 0 : index
    %160 = vector.load %arg9[%c0_58, %c0_59, %c0_60] : memref<2x32x128xbf16, #tpu.memory_space<vmem>>, vector<1x32x128xbf16>
    %161 = vector.shape_cast %160 : vector<1x32x128xbf16> to vector<32x128xbf16>
    %cst_61 = arith.constant dense<0.000000e+00> : vector<8x128xf32>
    %162 = tpu.matmul %159, %161, %cst_61 {dimension_numbers = #tpu.dot_dimension_numbers<[1], [0], [0], [1], [0, 0, 1, 1], [], []>} : vector<8x32xbf16>, vector<32x128xbf16>, vector<8x128xf32> -> vector<8x128xf32>
    %163 = vector.shape_cast %71 : vector<128xf32> to vector<1x128xf32>
    %164 = vector.broadcast %163 : vector<1x128xf32> to vector<8x128xf32>
    %165 = arith.addf %162, %164 : vector<8x128xf32>
    %cst_62 = arith.constant 1.702000e+00 : f32
    %166 = vector.broadcast %cst_62 : f32 to vector<8x128xf32>
    %167 = arith.mulf %166, %165 : vector<8x128xf32>
    %168 = arith.negf %167 : vector<8x128xf32>
    %169 = math.exp %168 : vector<8x128xf32>
    %cst_63 = arith.constant 1.000000e+00 : f32
    %170 = vector.broadcast %cst_63 : f32 to vector<8x128xf32>
    %171 = arith.addf %170, %169 : vector<8x128xf32>
    %172 = arith.divf %170, %171 : vector<8x128xf32>
    %173 = arith.mulf %165, %172 : vector<8x128xf32>
    %174 = arith.truncf %173 : vector<8x128xf32> to vector<8x128xbf16>
    %c0_64 = arith.constant 0 : index
    %c0_65 = arith.constant 0 : index
    %c0_66 = arith.constant 0 : index
    %175 = vector.load %arg10[%c0_64, %c0_65, %c0_66] : memref<2x128x32xbf16, #tpu.memory_space<vmem>>, vector<1x128x32xbf16>
    %176 = vector.shape_cast %175 : vector<1x128x32xbf16> to vector<128x32xbf16>
    %cst_67 = arith.constant dense<0.000000e+00> : vector<8x32xf32>
    %177 = tpu.matmul %174, %176, %cst_67 {dimension_numbers = #tpu.dot_dimension_numbers<[1], [0], [0], [1], [0, 0, 1, 1], [], []>} : vector<8x128xbf16>, vector<128x32xbf16>, vector<8x32xf32> -> vector<8x32xf32>
    %178 = vector.shape_cast %73 : vector<32xf32> to vector<1x32xf32>
    %179 = vector.broadcast %178 : vector<1x32xf32> to vector<8x32xf32>
    %180 = arith.addf %177, %179 : vector<8x32xf32>
    %181 = arith.addf %134, %180 : vector<8x32xf32>
    %c1_68 = arith.constant 1 : index
    %c0_69 = arith.constant 0 : index
    %c0_70 = arith.constant 0 : index
    %182 = vector.load %arg6[%c1_68, %c0_69, %c0_70] : memref<3x8x128xf32, #tpu.memory_space<vmem>>, vector<1x8x128xf32>
    %183 = vector.shape_cast %182 : vector<1x8x128xf32> to vector<8x128xf32>
    %184 = vector.extract_strided_slice %183 {offsets = [0, 0], sizes = [1, 32], strides = [1, 1]} : vector<8x128xf32> to vector<1x32xf32>
    %185 = vector.shape_cast %184 : vector<1x32xf32> to vector<32xf32>
    %186 = vector.extract_strided_slice %183 {offsets = [1, 0], sizes = [1, 32], strides = [1, 1]} : vector<8x128xf32> to vector<1x32xf32>
    %187 = vector.shape_cast %186 : vector<1x32xf32> to vector<32xf32>
    %188 = vector.extract_strided_slice %183 {offsets = [2, 0], sizes = [1, 96], strides = [1, 1]} : vector<8x128xf32> to vector<1x96xf32>
    %189 = vector.shape_cast %188 : vector<1x96xf32> to vector<96xf32>
    %190 = vector.extract_strided_slice %183 {offsets = [3, 0], sizes = [1, 32], strides = [1, 1]} : vector<8x128xf32> to vector<1x32xf32>
    %191 = vector.shape_cast %190 : vector<1x32xf32> to vector<32xf32>
    %192 = vector.extract_strided_slice %183 {offsets = [4, 0], sizes = [1, 32], strides = [1, 1]} : vector<8x128xf32> to vector<1x32xf32>
    %193 = vector.shape_cast %192 : vector<1x32xf32> to vector<32xf32>
    %194 = vector.extract_strided_slice %183 {offsets = [5, 0], sizes = [1, 32], strides = [1, 1]} : vector<8x128xf32> to vector<1x32xf32>
    %195 = vector.shape_cast %194 : vector<1x32xf32> to vector<32xf32>
    %196 = vector.extract_strided_slice %183 {offsets = [6, 0], sizes = [1, 128], strides = [1, 1]} : vector<8x128xf32> to vector<1x128xf32>
    %197 = vector.shape_cast %196 : vector<1x128xf32> to vector<128xf32>
    %198 = vector.extract_strided_slice %183 {offsets = [7, 0], sizes = [1, 32], strides = [1, 1]} : vector<8x128xf32> to vector<1x32xf32>
    %199 = vector.shape_cast %198 : vector<1x32xf32> to vector<32xf32>
    %cst_71 = arith.constant dense<0.000000e+00> : vector<8xf32>
    %200 = vector.multi_reduction <add>, %181, %cst_71 [1] : vector<8x32xf32> to vector<8xf32>
    %201 = vector.shape_cast %200 : vector<8xf32> to vector<8x1xf32>
    %cst_72 = arith.constant 3.200000e+01 : f32
    %202 = vector.broadcast %cst_72 : f32 to vector<8x1xf32>
    %203 = arith.divf %201, %202 : vector<8x1xf32>
    %204 = vector.broadcast %203 : vector<8x1xf32> to vector<8x32xf32>
    %205 = arith.subf %181, %204 : vector<8x32xf32>
    %206 = arith.mulf %205, %205 : vector<8x32xf32>
    %cst_73 = arith.constant dense<0.000000e+00> : vector<8xf32>
    %207 = vector.multi_reduction <add>, %206, %cst_73 [1] : vector<8x32xf32> to vector<8xf32>
    %208 = vector.shape_cast %207 : vector<8xf32> to vector<8x1xf32>
    %cst_74 = arith.constant 3.200000e+01 : f32
    %209 = vector.broadcast %cst_74 : f32 to vector<8x1xf32>
    %210 = arith.divf %208, %209 : vector<8x1xf32>
    %211 = vector.broadcast %203 : vector<8x1xf32> to vector<8x32xf32>
    %212 = arith.subf %181, %211 : vector<8x32xf32>
    %cst_75 = arith.constant 9.99999974E-6 : f32
    %213 = vector.broadcast %cst_75 : f32 to vector<8x1xf32>
    %214 = arith.addf %210, %213 : vector<8x1xf32>
    %215 = math.rsqrt %214 : vector<8x1xf32>
    %216 = vector.broadcast %215 : vector<8x1xf32> to vector<8x32xf32>
    %217 = arith.mulf %212, %216 : vector<8x32xf32>
    %218 = vector.shape_cast %185 : vector<32xf32> to vector<1x32xf32>
    %219 = vector.broadcast %218 : vector<1x32xf32> to vector<8x32xf32>
    %220 = arith.mulf %217, %219 : vector<8x32xf32>
    %221 = vector.shape_cast %187 : vector<32xf32> to vector<1x32xf32>
    %222 = vector.broadcast %221 : vector<1x32xf32> to vector<8x32xf32>
    %223 = arith.addf %220, %222 : vector<8x32xf32>
    %224 = arith.truncf %223 : vector<8x32xf32> to vector<8x32xbf16>
    %c1_76 = arith.constant 1 : index
    %c0_77 = arith.constant 0 : index
    %c0_78 = arith.constant 0 : index
    %225 = vector.load %arg7[%c1_76, %c0_77, %c0_78] : memref<2x32x96xbf16, #tpu.memory_space<vmem>>, vector<1x32x96xbf16>
    %226 = vector.shape_cast %225 : vector<1x32x96xbf16> to vector<32x96xbf16>
    %cst_79 = arith.constant dense<0.000000e+00> : vector<8x96xf32>
    %227 = tpu.matmul %224, %226, %cst_79 {dimension_numbers = #tpu.dot_dimension_numbers<[1], [0], [0], [1], [0, 0, 1, 1], [], []>} : vector<8x32xbf16>, vector<32x96xbf16>, vector<8x96xf32> -> vector<8x96xf32>
    %228 = vector.shape_cast %189 : vector<96xf32> to vector<1x96xf32>
    %229 = vector.broadcast %228 : vector<1x96xf32> to vector<8x96xf32>
    %230 = arith.addf %227, %229 : vector<8x96xf32>
    %231 = tpu.transpose %230, [1, 0] : vector<8x96xf32> -> vector<96x8xf32>
    %232 = vector.shape_cast %231 : vector<96x8xf32> to vector<12x8x8xf32>
    %233 = tpu.transpose %232, [0, 2, 1] : vector<12x8x8xf32> -> vector<12x8x8xf32>
    %234 = vector.extract_strided_slice %233 {offsets = [0, 0, 0], sizes = [4, 8, 8], strides = [1, 1, 1]} : vector<12x8x8xf32> to vector<4x8x8xf32>
    %235 = vector.extract_strided_slice %233 {offsets = [4, 0, 0], sizes = [4, 8, 8], strides = [1, 1, 1]} : vector<12x8x8xf32> to vector<4x8x8xf32>
    %236 = vector.extract_strided_slice %233 {offsets = [8, 0, 0], sizes = [4, 8, 8], strides = [1, 1, 1]} : vector<12x8x8xf32> to vector<4x8x8xf32>
    "tpu.trace_start"() <{level = 10 : i32, message = "hqd,hkd->hqk"}> : () -> ()
    %cst_80 = arith.constant dense<0.000000e+00> : vector<4x8x8xf32>
    %237 = tpu.matmul %234, %235, %cst_80 {dimension_numbers = #tpu.dot_dimension_numbers<[2], [2], [1], [1], [0, 0, 0, 1, 1, 1], [0], [0]>} : vector<4x8x8xf32>, vector<4x8x8xf32>, vector<4x8x8xf32> -> vector<4x8x8xf32>
    "tpu.trace_stop"() : () -> ()
    %238 = vector.shape_cast %55 : vector<8x8xf32> to vector<1x8x8xf32>
    %239 = vector.broadcast %238 : vector<1x8x8xf32> to vector<4x8x8xf32>
    %240 = arith.addf %237, %239 : vector<4x8x8xf32>
    %241 = math.exp %240 : vector<4x8x8xf32>
    %cst_81 = arith.constant dense<0.000000e+00> : vector<4x8xf32>
    %242 = vector.multi_reduction <add>, %241, %cst_81 [2] : vector<4x8x8xf32> to vector<4x8xf32>
    %243 = vector.shape_cast %242 : vector<4x8xf32> to vector<4x8x1xf32>
    %cst_82 = arith.constant 9.99999997E-7 : f32
    %244 = vector.broadcast %cst_82 : f32 to vector<4x8x1xf32>
    %245 = arith.addf %243, %244 : vector<4x8x1xf32>
    %246 = tpu.reciprocal %245 {approx = true} : vector<4x8x1xf32> -> vector<4x8x1xf32>
    %247 = vector.broadcast %246 : vector<4x8x1xf32> to vector<4x8x8xf32>
    %248 = arith.mulf %241, %247 : vector<4x8x8xf32>
    "tpu.trace_start"() <{level = 10 : i32, message = "hqk,hkd->hqd"}> : () -> ()
    %cst_83 = arith.constant dense<0.000000e+00> : vector<4x8x8xf32>
    %249 = tpu.matmul %248, %236, %cst_83 {dimension_numbers = #tpu.dot_dimension_numbers<[2], [1], [1], [2], [0, 0, 0, 1, 1, 2], [0], [0]>} : vector<4x8x8xf32>, vector<4x8x8xf32>, vector<4x8x8xf32> -> vector<4x8x8xf32>
    "tpu.trace_stop"() : () -> ()
    %250 = tpu.transpose %249, [0, 2, 1] : vector<4x8x8xf32> -> vector<4x8x8xf32>
    %251 = vector.shape_cast %250 : vector<4x8x8xf32> to vector<32x8xf32>
    %252 = tpu.transpose %251, [1, 0] : vector<32x8xf32> -> vector<8x32xf32>
    %253 = arith.truncf %252 : vector<8x32xf32> to vector<8x32xbf16>
    %c1_84 = arith.constant 1 : index
    %c0_85 = arith.constant 0 : index
    %c0_86 = arith.constant 0 : index
    %254 = vector.load %arg8[%c1_84, %c0_85, %c0_86] : memref<2x32x32xbf16, #tpu.memory_space<vmem>>, vector<1x32x32xbf16>
    %255 = vector.shape_cast %254 : vector<1x32x32xbf16> to vector<32x32xbf16>
    %cst_87 = arith.constant dense<0.000000e+00> : vector<8x32xf32>
    %256 = tpu.matmul %253, %255, %cst_87 {dimension_numbers = #tpu.dot_dimension_numbers<[1], [0], [0], [1], [0, 0, 1, 1], [], []>} : vector<8x32xbf16>, vector<32x32xbf16>, vector<8x32xf32> -> vector<8x32xf32>
    %257 = vector.shape_cast %191 : vector<32xf32> to vector<1x32xf32>
    %258 = vector.broadcast %257 : vector<1x32xf32> to vector<8x32xf32>
    %259 = arith.addf %256, %258 : vector<8x32xf32>
    %260 = arith.addf %181, %259 : vector<8x32xf32>
    %cst_88 = arith.constant dense<0.000000e+00> : vector<8xf32>
    %261 = vector.multi_reduction <add>, %260, %cst_88 [1] : vector<8x32xf32> to vector<8xf32>
    %262 = vector.shape_cast %261 : vector<8xf32> to vector<8x1xf32>
    %cst_89 = arith.constant 3.200000e+01 : f32
    %263 = vector.broadcast %cst_89 : f32 to vector<8x1xf32>
    %264 = arith.divf %262, %263 : vector<8x1xf32>
    %265 = vector.broadcast %264 : vector<8x1xf32> to vector<8x32xf32>
    %266 = arith.subf %260, %265 : vector<8x32xf32>
    %267 = arith.mulf %266, %266 : vector<8x32xf32>
    %cst_90 = arith.constant dense<0.000000e+00> : vector<8xf32>
    %268 = vector.multi_reduction <add>, %267, %cst_90 [1] : vector<8x32xf32> to vector<8xf32>
    %269 = vector.shape_cast %268 : vector<8xf32> to vector<8x1xf32>
    %cst_91 = arith.constant 3.200000e+01 : f32
    %270 = vector.broadcast %cst_91 : f32 to vector<8x1xf32>
    %271 = arith.divf %269, %270 : vector<8x1xf32>
    %272 = vector.broadcast %264 : vector<8x1xf32> to vector<8x32xf32>
    %273 = arith.subf %260, %272 : vector<8x32xf32>
    %cst_92 = arith.constant 9.99999974E-6 : f32
    %274 = vector.broadcast %cst_92 : f32 to vector<8x1xf32>
    %275 = arith.addf %271, %274 : vector<8x1xf32>
    %276 = math.rsqrt %275 : vector<8x1xf32>
    %277 = vector.broadcast %276 : vector<8x1xf32> to vector<8x32xf32>
    %278 = arith.mulf %273, %277 : vector<8x32xf32>
    %279 = vector.shape_cast %193 : vector<32xf32> to vector<1x32xf32>
    %280 = vector.broadcast %279 : vector<1x32xf32> to vector<8x32xf32>
    %281 = arith.mulf %278, %280 : vector<8x32xf32>
    %282 = vector.shape_cast %195 : vector<32xf32> to vector<1x32xf32>
    %283 = vector.broadcast %282 : vector<1x32xf32> to vector<8x32xf32>
    %284 = arith.addf %281, %283 : vector<8x32xf32>
    %285 = arith.truncf %284 : vector<8x32xf32> to vector<8x32xbf16>
    %c1_93 = arith.constant 1 : index
    %c0_94 = arith.constant 0 : index
    %c0_95 = arith.constant 0 : index
    %286 = vector.load %arg9[%c1_93, %c0_94, %c0_95] : memref<2x32x128xbf16, #tpu.memory_space<vmem>>, vector<1x32x128xbf16>
    %287 = vector.shape_cast %286 : vector<1x32x128xbf16> to vector<32x128xbf16>
    %cst_96 = arith.constant dense<0.000000e+00> : vector<8x128xf32>
    %288 = tpu.matmul %285, %287, %cst_96 {dimension_numbers = #tpu.dot_dimension_numbers<[1], [0], [0], [1], [0, 0, 1, 1], [], []>} : vector<8x32xbf16>, vector<32x128xbf16>, vector<8x128xf32> -> vector<8x128xf32>
    %289 = vector.shape_cast %197 : vector<128xf32> to vector<1x128xf32>
    %290 = vector.broadcast %289 : vector<1x128xf32> to vector<8x128xf32>
    %291 = arith.addf %288, %290 : vector<8x128xf32>
    %cst_97 = arith.constant 1.702000e+00 : f32
    %292 = vector.broadcast %cst_97 : f32 to vector<8x128xf32>
    %293 = arith.mulf %292, %291 : vector<8x128xf32>
    %294 = arith.negf %293 : vector<8x128xf32>
    %295 = math.exp %294 : vector<8x128xf32>
    %cst_98 = arith.constant 1.000000e+00 : f32
    %296 = vector.broadcast %cst_98 : f32 to vector<8x128xf32>
    %297 = arith.addf %296, %295 : vector<8x128xf32>
    %298 = arith.divf %296, %297 : vector<8x128xf32>
    %299 = arith.mulf %291, %298 : vector<8x128xf32>
    %300 = arith.truncf %299 : vector<8x128xf32> to vector<8x128xbf16>
    %c1_99 = arith.constant 1 : index
    %c0_100 = arith.constant 0 : index
    %c0_101 = arith.constant 0 : index
    %301 = vector.load %arg10[%c1_99, %c0_100, %c0_101] : memref<2x128x32xbf16, #tpu.memory_space<vmem>>, vector<1x128x32xbf16>
    %302 = vector.shape_cast %301 : vector<1x128x32xbf16> to vector<128x32xbf16>
    %cst_102 = arith.constant dense<0.000000e+00> : vector<8x32xf32>
    %303 = tpu.matmul %300, %302, %cst_102 {dimension_numbers = #tpu.dot_dimension_numbers<[1], [0], [0], [1], [0, 0, 1, 1], [], []>} : vector<8x128xbf16>, vector<128x32xbf16>, vector<8x32xf32> -> vector<8x32xf32>
    %304 = vector.shape_cast %199 : vector<32xf32> to vector<1x32xf32>
    %305 = vector.broadcast %304 : vector<1x32xf32> to vector<8x32xf32>
    %306 = arith.addf %303, %305 : vector<8x32xf32>
    %307 = arith.addf %260, %306 : vector<8x32xf32>
    %c2_103 = arith.constant 2 : index
    %c0_104 = arith.constant 0 : index
    %c0_105 = arith.constant 0 : index
    %308 = vector.load %arg6[%c2_103, %c0_104, %c0_105] : memref<3x8x128xf32, #tpu.memory_space<vmem>>, vector<1x1x32xf32>
    %309 = vector.shape_cast %308 : vector<1x1x32xf32> to vector<32xf32>
    %c2_106 = arith.constant 2 : index
    %c1_107 = arith.constant 1 : index
    %c0_108 = arith.constant 0 : index
    %310 = vector.load %arg6[%c2_106, %c1_107, %c0_108] : memref<3x8x128xf32, #tpu.memory_space<vmem>>, vector<1x1x32xf32>
    %311 = vector.shape_cast %310 : vector<1x1x32xf32> to vector<32xf32>
    %312 = arith.index_cast %arg0 : i32 to index
    %313 = memref.load %arg2[%312] : memref<2xi32, #tpu.memory_space<smem>>
    %314 = tpu.iota {dimensions = array<i32: 0>} : vector<8x1xi32>
    %315 = vector.broadcast %313 : i32 to vector<8x1xi32>
    %316 = arith.cmpi eq, %314, %315 : vector<8x1xi32>
    %cst_109 = arith.constant 0.000000e+00 : f32
    %317 = vector.shape_cast %316 : vector<8x1xi1> to vector<8x1xi1>
    %318 = vector.broadcast %317 : vector<8x1xi1> to vector<8x32xi1>
    %319 = vector.broadcast %cst_109 : f32 to vector<8x32xf32>
    %320 = arith.select %318, %307, %319 : vector<8x32xi1>, vector<8x32xf32>
    %cst_110 = arith.constant dense<0.000000e+00> : vector<32xf32>
    %321 = vector.multi_reduction <add>, %320, %cst_110 [0] : vector<8x32xf32> to vector<32xf32>
    %322 = vector.shape_cast %321 : vector<32xf32> to vector<1x32xf32>
    %cst_111 = arith.constant dense<0.000000e+00> : vector<1xf32>
    %323 = vector.multi_reduction <add>, %322, %cst_111 [1] : vector<1x32xf32> to vector<1xf32>
    %324 = vector.shape_cast %323 : vector<1xf32> to vector<1x1xf32>
    %cst_112 = arith.constant 3.200000e+01 : f32
    %325 = vector.broadcast %cst_112 : f32 to vector<1x1xf32>
    %326 = arith.divf %324, %325 : vector<1x1xf32>
    %327 = vector.broadcast %326 : vector<1x1xf32> to vector<1x32xf32>
    %328 = arith.subf %322, %327 : vector<1x32xf32>
    %329 = arith.mulf %328, %328 : vector<1x32xf32>
    %cst_113 = arith.constant dense<0.000000e+00> : vector<1xf32>
    %330 = vector.multi_reduction <add>, %329, %cst_113 [1] : vector<1x32xf32> to vector<1xf32>
    %331 = vector.shape_cast %330 : vector<1xf32> to vector<1x1xf32>
    %cst_114 = arith.constant 3.200000e+01 : f32
    %332 = vector.broadcast %cst_114 : f32 to vector<1x1xf32>
    %333 = arith.divf %331, %332 : vector<1x1xf32>
    %334 = vector.broadcast %326 : vector<1x1xf32> to vector<1x32xf32>
    %335 = arith.subf %322, %334 : vector<1x32xf32>
    %cst_115 = arith.constant 9.99999974E-6 : f32
    %336 = vector.broadcast %cst_115 : f32 to vector<1x1xf32>
    %337 = arith.addf %333, %336 : vector<1x1xf32>
    %338 = math.rsqrt %337 : vector<1x1xf32>
    %339 = vector.broadcast %338 : vector<1x1xf32> to vector<1x32xf32>
    %340 = arith.mulf %335, %339 : vector<1x32xf32>
    %341 = vector.shape_cast %309 : vector<32xf32> to vector<1x32xf32>
    %342 = arith.mulf %340, %341 : vector<1x32xf32>
    %343 = vector.shape_cast %311 : vector<32xf32> to vector<1x32xf32>
    %344 = arith.addf %342, %343 : vector<1x32xf32>
    %345 = arith.truncf %344 : vector<1x32xf32> to vector<1x32xbf16>
    %c0_116 = arith.constant 0 : index
    %c0_117 = arith.constant 0 : index
    %346 = vector.load %arg11[%c0_116, %c0_117] : memref<32x32xbf16, #tpu.memory_space<vmem>>, vector<32x32xbf16>
    %cst_118 = arith.constant dense<0.000000e+00> : vector<1x32xf32>
    %347 = tpu.matmul %345, %346, %cst_118 {dimension_numbers = #tpu.dot_dimension_numbers<[1], [0], [0], [1], [0, 0, 1, 1], [], []>} : vector<1x32xbf16>, vector<32x32xbf16>, vector<1x32xf32> -> vector<1x32xf32>
    %348 = vector.shape_cast %347 : vector<1x32xf32> to vector<1x1x32xf32>
    %c0_119 = arith.constant 0 : index
    %c0_120 = arith.constant 0 : index
    %c0_121 = arith.constant 0 : index
    %349 = vector.load %arg12[%c0_119, %c0_120, %c0_121] : memref<1x1x32xf32, #tpu.memory_space<vmem>>, vector<1x1x32xf32>
    tpu.vector_store %arg12[%c0_119, %c0_120, %c0_121], %348 {strides = array<i32>} : memref<1x1x32xf32, #tpu.memory_space<vmem>>, vector<1x1x32xf32>,
    return
  }
  func.func @transform_0(%arg0: i32, %arg1: memref<2x8xi32, #tpu.memory_space<smem>>, %arg2: memref<2xi32, #tpu.memory_space<smem>>) -> (i32, i32, i32) {
    %c0_i32 = arith.constant 0 : i32
    %c0_i32_0 = arith.constant 0 : i32
    %c0_i32_1 = arith.constant 0 : i32
    return %arg0, %c0_i32, %c0_i32_0 : i32, i32, i32
  }
  func.func @transform_1(%arg0: i32, %arg1: memref<2x8xi32, #tpu.memory_space<smem>>, %arg2: memref<2xi32, #tpu.memory_space<smem>>) -> (i32, i32) {
    %c0_i32 = arith.constant 0 : i32
    %c0_i32_0 = arith.constant 0 : i32
    %c0_i32_1 = arith.constant 0 : i32
    return %c0_i32, %c0_i32_0 : i32, i32
  }
  func.func @transform_2(%arg0: i32, %arg1: memref<2x8xi32, #tpu.memory_space<smem>>, %arg2: memref<2xi32, #tpu.memory_space<smem>>) -> (i32, i32) {
    %c0_i32 = arith.constant 0 : i32
    %c0_i32_0 = arith.constant 0 : i32
    %c0_i32_1 = arith.constant 0 : i32
    return %c0_i32, %c0_i32_0 : i32, i32
  }
  func.func @transform_3(%arg0: i32, %arg1: memref<2x8xi32, #tpu.memory_space<smem>>, %arg2: memref<2xi32, #tpu.memory_space<smem>>) -> (i32, i32, i32) {
    %c0_i32 = arith.constant 0 : i32
    %c0_i32_0 = arith.constant 0 : i32
    %c0_i32_1 = arith.constant 0 : i32
    %c0_i32_2 = arith.constant 0 : i32
    return %c0_i32, %c0_i32_0, %c0_i32_1 : i32, i32, i32
  }
  func.func @transform_4(%arg0: i32, %arg1: memref<2x8xi32, #tpu.memory_space<smem>>, %arg2: memref<2xi32, #tpu.memory_space<smem>>) -> (i32, i32, i32) {
    %c0_i32 = arith.constant 0 : i32
    %c0_i32_0 = arith.constant 0 : i32
    %c0_i32_1 = arith.constant 0 : i32
    %c0_i32_2 = arith.constant 0 : i32
    return %c0_i32, %c0_i32_0, %c0_i32_1 : i32, i32, i32
  }
  func.func @transform_5(%arg0: i32, %arg1: memref<2x8xi32, #tpu.memory_space<smem>>, %arg2: memref<2xi32, #tpu.memory_space<smem>>) -> (i32, i32, i32) {
    %c0_i32 = arith.constant 0 : i32
    %c0_i32_0 = arith.constant 0 : i32
    %c0_i32_1 = arith.constant 0 : i32
    %c0_i32_2 = arith.constant 0 : i32
    return %c0_i32, %c0_i32_0, %c0_i32_1 : i32, i32, i32
  }
  func.func @transform_6(%arg0: i32, %arg1: memref<2x8xi32, #tpu.memory_space<smem>>, %arg2: memref<2xi32, #tpu.memory_space<smem>>) -> (i32, i32, i32) {
    %c0_i32 = arith.constant 0 : i32
    %c0_i32_0 = arith.constant 0 : i32
    %c0_i32_1 = arith.constant 0 : i32
    %c0_i32_2 = arith.constant 0 : i32
    return %c0_i32, %c0_i32_0, %c0_i32_1 : i32, i32, i32
  }
  func.func @transform_7(%arg0: i32, %arg1: memref<2x8xi32, #tpu.memory_space<smem>>, %arg2: memref<2xi32, #tpu.memory_space<smem>>) -> (i32, i32, i32) {
    %c0_i32 = arith.constant 0 : i32
    %c0_i32_0 = arith.constant 0 : i32
    %c0_i32_1 = arith.constant 0 : i32
    %c0_i32_2 = arith.constant 0 : i32
    return %c0_i32, %c0_i32_0, %c0_i32_1 : i32, i32, i32
  }
  func.func @transform_8(%arg0: i32, %arg1: memref<2x8xi32, #tpu.memory_space<smem>>, %arg2: memref<2xi32, #tpu.memory_space<smem>>) -> (i32, i32) {
    %c0_i32 = arith.constant 0 : i32
    %c0_i32_0 = arith.constant 0 : i32
    %c0_i32_1 = arith.constant 0 : i32
    return %c0_i32, %c0_i32_0 : i32, i32
  }
  func.func @transform_9(%arg0: i32, %arg1: memref<2x8xi32, #tpu.memory_space<smem>>, %arg2: memref<2xi32, #tpu.memory_space<smem>>) -> (i32, i32, i32) {
    %c0_i32 = arith.constant 0 : i32
    %c0_i32_0 = arith.constant 0 : i32
    %c0_i32_1 = arith.constant 0 : i32
    return %arg0, %c0_i32, %c0_i32_0 : i32, i32, i32
  }
}

</mosaic_0001>

<bundles_post_ra>
// kernel: clip_get_text_features.1
= control target key start
LH: loop header
LB: loop body
LE: loop exit
PB: predicated region body
PF: predicated region fallthrough
CT: control target
= control target key end

     0   :  { %s4842_s0 = inlined_call_operand.vmem [shape: s32[2,8], index: 0, kind: input, shape index: {}]   ;;  %s4843_s2 = inlined_call_operand.vmem [shape: f32[2,1,8], index: 2, kind: input, shape index: {}]   ;;  %s4844_s3 = inlined_call_operand.vmem [shape: f32[64,32], index: 3, kind: input, shape index: {}]   ;;  %s4845_s4 = inlined_call_operand.vmem [shape: f32[8,32], index: 4, kind: input, shape index: {}]   ;;  %s4846_s5 = inlined_call_operand.vmem [shape: f32[3,8,128], index: 5, kind: input, shape index: {}]   ;;  %s4847_s6 = inlined_call_operand.vmem [shape: bf16[2,32,96], index: 6, kind: input, shape index: {}]   ;;  %s4848_s7 = inlined_call_operand.vmem [shape: bf16[2,32,32], index: 7, kind: input, shape index: {}]   ;;  %s4849_s8 = inlined_call_operand.vmem [shape: bf16[2,32,128], index: 8, kind: input, shape index: {}]   ;;  %s4850_s9 = inlined_call_operand.vmem [shape: bf16[2,128,32], index: 9, kind: input, shape index: {}]   ;;  %s4851_s10 = inlined_call_operand.vmem [shape: bf16[32,32], index: 10, kind: input, shape index: {}]   ;;  %s4852_s11 = inlined_call_operand.hbm [shape: f32[2,1,32], index: 11, kind: output, shape index: {}]   ;;  %s4853_s1 = inlined_call_operand.vmem [shape: s32[2], index: 1, kind: input, shape index: {}]  }
   0x1   :  { %4863 = sst [smem:[#allocation17_spill]] %s4852_s11  ;;  %s16_s19 = sshll.u32 %s4842_s0, 4  ;;  %s17_s19 = int_to_ptr.vmem [resolvable:$true] %s16_s19 }
   0x2   :  { %s20_s22 = sshll.u32 %s4853_s1, 4  ;;  %s4183_s23 = scalar_lea.vmem %s17_s19, 32  ;;  %s21_s22 = int_to_ptr.vmem [resolvable:$true] %s20_s22 }
   0x3   :  { %p4184_p0 = scmp.ne.s32.totalorder %s17_s19, %s4183_s23  ;;  %p4188_p1 = scmp.lt.s32.totalorder %s17_s19, %s17_s19 }
   0x4   :  { %p4189_p2 = scmp.lt.s32.totalorder %s4183_s23, %s4183_s23 }
   0x6   :  { %p4190_p3 = por %p4189_p2, %p4188_p1 }
   0x8   :  { %p4191_p4 = pnand %p4190_p3, %p4184_p0 }
   0xa   :  { %4194 = shalt.err (!%p4191_p4)  }
   0xb   :  { %s4273_s24 = smov [#allocation4]   ;;  %s4195_s25 = scalar_lea.vmem %s21_s22, 16 }
   0xc   :  { %19 = dma.vmem_to_smem %s17_s19, 32, %s4273_s24, [#allocation3] }
   0xd   :  { %p4196_p5 = scmp.ne.s32.totalorder %s21_s22, %s4195_s25  ;;  %p4200_p6 = scmp.lt.s32.totalorder %s21_s22, %s21_s22 }
   0xe   :  { %p4201_p7 = scmp.lt.s32.totalorder %s4195_s25, %s4195_s25 }
  0x10   :  { %p4202_p8 = por %p4201_p7, %p4200_p6 }
  0x12   :  { %p4203_p9 = pnand %p4202_p8, %p4196_p5 }
  0x14   :  { %4206 = shalt.err (!%p4203_p9)  }
  0x15   :  { %s4274_s0 = smov [#allocation5]  }
  0x16   :  { %23 = dma.vmem_to_smem %s21_s22, 16, %s4274_s0, [#allocation3] }
  0x17   :  { %4251 = dma.done.wait [#allocation3], 48 }
  0x18   :  { %4252 = vsyncadd [#allocation3], 4294967248 }
  0x19   :  { %25 = sfence }
  0x1a   :  { %26 = vsyncpa [#allocation7], 0 }
  0x1b   :  { %28 = vsyncpa [#allocation7 + $0x1], 0  ;;  %s4347_s1 = smov 0   ;;  %s4349_s26 = smov 0  }
  0x1c   :  { %s4351_s27 = smov 0   ;;  %s4353_s28 = smov 0  }
  0x1d LB: > { %4864 = sst [smem:[#allocation10_spill]] %s4259_s1  ;;  %s4368_s29 = sadd.s32 4294967295, %s4271_s28   ;;  %s4271_s28 = sphi %s4353_s28, %s4879_s28   ;;  %s4267_s27 = sphi %s4351_s27, %s4881_s27   ;;  %s4263_s26 = sphi %s4349_s26, %s4883_s26   ;;  %s4259_s1 = sphi %s4347_s1, %s4882_s1  }
  0x1e   : > { %4865 = sst [smem:[#allocation11_spill]] %s4267_s27  ;;  %s3708_s30 = sadd.s32 4294967294, %s4271_s28  }
  0x1f   : > { %4866 = sst [smem:[#allocation12_spill]] %s4271_s28  ;;  %s4372_s12 = sadd.s32 1, %s4271_s28  }
  0x20   : > { %4867 = sst [smem:[#allocation13_spill]] %s4372_s12  ;;  %s235_s13 = sadd.s32 1, %s4267_s27 }
  0x21   : > { %s232_s14 = ssub.s32 %s4271_s28, %s4372_s12  ;;  %p245_p10 = scmp.ne.s32.totalorder %s4267_s27, %s4263_s26 }
  0x22   : > { %p233_p11 = scmp.eq.s32.totalorder %s232_s14, 0  ;;  %p246_p12 = scmp.eq.s32.totalorder %s4368_s29, 1 }
  0x23   : > { %p251_p13 = scmp.ne.s32.totalorder %s4263_s26, %s4259_s1  ;;  %p252_p0 = scmp.eq.s32.totalorder %s3708_s30, 1 }
  0x24   : > { %s4383_s15 = scalar_select %p233_p11, %s4267_s27, %s235_s13  }
  0x25   : > { %p4385_p1 = por %p246_p12, %p245_p10  ;;  %p4389_p2 = por %p252_p0, %p251_p13 }
  0x26   : > { %4868 = sst [smem:[#allocation14_spill]] %s4383_s15  ;;  %p3711_p3 = scmp.ge.s32.totalorder %s4271_s28, 1 }
  0x27   : > { %s4869_s16 = scalar_select %p4385_p1, 1, 0 }
  0x28   : > { %s4871_s17 = scalar_select %p4389_p2, 1, 0 }
  0x29   : > { %4870 = sst [smem:[#allocation15_spill]] %s4869_s16  ;;  %p300_p4 = scmp.lt.s32.totalorder %s4271_s28, 3 }
  0x2a   : > { %4872 = sst [smem:[#allocation16_spill]] %s4871_s17 }
  0x2b   : > { %p301_p5 = pnand %p3711_p3, %p300_p4 }
  0x2c   : > { %s3712_s18 = sshll.u32 (!%p301_p5), %s4368_s29, 7  ;;  %vm341_vm0 = vcmask (!%p301_p5), 253952   ;;  %v379_v8 = vld [vmem:[%s4845_s4] sm:$0xff] (!%p301_p5)  ;;  %vm412_vm1 = vcmask (!%p301_p5), 261120   ;;  %v4275_v18 = vmov (!%p301_p5), 0.0   ;;  %vm4276_vm2 = vmmov (!%p301_p5), 0  }
  0x2d   : > { %304 = sbr.rel (%p301_p5) target bundleno = 6007 (0x1777), region = 56  ;;  %s338_s19 = sld [smem:[#allocation4 + %s3712_s18]] (!%p301_p5)  ;;  %v4103_v17 = vld [vmem:[%s4847_s6] sm:$0xff] (!%p301_p5)   ;;  %3881 = vmatprep.subr.bf16.mxu0 (!%p301_p5), %v4275_v18  ;;  %3885 = vmatprep.mubr.msk.bf16.mxu0 (!%p301_p5), %vm4276_vm2, %v4275_v18  ;;  %v4104_v19 = vld [vmem:[%s4847_s6 + $0x8] sm:$0xff] (!%p301_p5)   ;;  %v382_v22 = vlaneseq (!%p301_p5)  ;;  %vm917_vm3 = vcmask (!%p301_p5), 64512  }
  0x2e   : > { %s343_s20 = sadd.s32 (!%p301_p5), 1, %s3712_s18  ;;  %s348_s22 = sadd.s32 (!%p301_p5), 2, %s3712_s18  ;;  %3882 = vmatpush3.bf16.msra.mxu0 (!%p301_p5), %v4103_v17  ;;  %3889 = vmatprep.subr.mxu1 (!%p301_p5), %v4275_v18  ;;  %v4458_v26 = vld [vmem:[%s4846_s5] sm:$0xff] (!%p301_p5)  ;;  %v4277_v63 = vmov (!%p301_p5), 1966171168  }
  0x2f   : > { %s344_s21 = sld [smem:[#allocation4 + %s343_s20]] (!%p301_p5)  ;;  %s353_s24 = sadd.s32 (!%p301_p5), 3, %s3712_s18  ;;  %3883 = vmatprep.subr.bf16.mxu0 (!%p301_p5), %v4275_v18  ;;  %3891 = vmatprep.mubr.msk.f32.mxu1 (!%p301_p5), %vm4276_vm2, %v4275_v18  ;;  %v4452_v24 = vshrl.u32 (!%p301_p5), %v382_v22, 7 }
  0x30   : > { %s349_s23 = sld [smem:[#allocation4 + %s348_s22]] (!%p301_p5)  ;;  %s358_s0 = sadd.s32 (!%p301_p5), 4, %s3712_s18 }
  0x31   : > { %s354_s25 = sld [smem:[#allocation4 + %s353_s24]] (!%p301_p5)  ;;  %s363_s13 = sadd.s32 (!%p301_p5), 5, %s3712_s18  ;;  %v429_v25 = vsub.s32 (!%p301_p5), 0, %v4452_v24  ;;  %v434_v27 = vsub.s32 (!%p301_p5), 1, %v4452_v24  ;;  %v444_v35 = vsub.s32 (!%p301_p5), 2, %v4452_v24 }
  0x32   : > { %s359_s30 = sld [smem:[#allocation4 + %s358_s0]] (!%p301_p5)  ;;  %s368_s15 = sadd.s32 (!%p301_p5), 6, %s3712_s18  ;;  %3884 = vmatpush3.bf16.msra.mxu0 (!%p301_p5), %v4104_v19 }
  0x33   : > { %s364_s14 = sld [smem:[#allocation4 + %s363_s13]] (!%p301_p5)  ;;  %s339_s17 = scalar_lea.vmem (!%p301_p5), %s4844_s3, %s338_s19  ;;  %3904 = vmatprep.subr.mxu0 (!%p301_p5), %v4275_v18  ;;  %v430_v28 = vrot.slane (!%p301_p5), %v4458_v26, %v429_v25  ;;  %v435_v31 = vrot.slane (!%p301_p5), %v4458_v26, %v434_v27  ;;  %v445_v36 = vrot.slane (!%p301_p5), %v4458_v26, %v444_v35 }
  0x34   : > { %s369_s1 = sld [smem:[#allocation4 + %s368_s15]]  ;;  %v340_v0 = vld [vmem:[%s339_s17] sm:$0x1]  ;;  %s373_s20 = sadd.s32 7, %s3712_s18 }
  0x35   : > { %s345_s16 = scalar_lea.vmem %s4844_s3, %s344_s21  ;;  %342 = vst.msk [vmem:[#allocation2] sm:$0x1] %vm341_vm0, %v340_v0  ;;  %s374_s13 = sld [smem:[#allocation4 + %s373_s20]]  ;;  %v393_v0 = vunpack.c.l.s4 %v4277_v63 }
  0x36   : > { %v346_v1 = vld [vmem:[%s345_s16] sm:$0x1]  ;;  %s350_s0 = scalar_lea.vmem %s4844_s3, %s349_s23  ;;  %p333_p6 = scmp.lt.s32.totalorder %s4368_s29, 1 }
  0x37   : > { %347 = vst.msk [vmem:[#allocation2 + $0x1] sm:$0x1] %vm341_vm0, %v346_v1  ;;  %v351_v2 = vld [vmem:[%s350_s0] sm:$0x1]  ;;  %s355_s15 = scalar_lea.vmem %s4844_s3, %s354_s25  ;;  %v394_v1 = vunpack.c.0.s8 %v393_v0  ;;  %s3546_s12 = sld [smem:[#allocation5 + %s4368_s29]] }
  0x38   : > { %352 = vst.msk [vmem:[#allocation2 + $0x2] sm:$0x1] %vm341_vm0, %v351_v2  ;;  %v356_v3 = vld [vmem:[%s355_s15] sm:$0x1]  ;;  %s360_s17 = scalar_lea.vmem %s4844_s3, %s359_s30  ;;  %v4278_v2 = vmov 0   ;;  %s3807_s30 = sshll.u32 %s4368_s29, 4 }
  0x39   : > { %357 = vst.msk [vmem:[#allocation2 + $0x3] sm:$0x1] %vm341_vm0, %v356_v3  ;;  %v361_v4 = vld [vmem:[%s360_s17] sm:$0x1]  ;;  %s365_s19 = scalar_lea.vmem %s4844_s3, %s364_s14 }
  0x3a   : > { %362 = vst.msk [vmem:[#allocation2 + $0x4] sm:$0x1] %vm341_vm0, %v361_v4  ;;  %v366_v5 = vld [vmem:[%s365_s19] sm:$0x1]  ;;  %s370_s25 = scalar_lea.vmem %s4844_s3, %s369_s1  ;;  %s4874_s1 = sld [smem:[#allocation17_spill]] }
  0x3b   : > { %367 = vst.msk [vmem:[#allocation2 + $0x5] sm:$0x1] %vm341_vm0, %v366_v5  ;;  %v371_v6 = vld [vmem:[%s370_s25] sm:$0x1]  ;;  %s375_s22 = scalar_lea.vmem %s4844_s3, %s374_s13  ;;  %v397_v5 = vsub.s32 %v394_v1, %v4452_v24  ;;  %s331_s25 = sand.u32 1, %s4263_s26  }
  0x3c   : > { %372 = vst.msk [vmem:[#allocation2 + $0x6] sm:$0x1] %vm341_vm0, %v371_v6  ;;  %v376_v7 = vld [vmem:[%s375_s22] sm:$0x1]  ;;  %s334_s11 = scalar_select %p333_p6, %s4368_s29, 1 }
  0x3d   : > { %377 = vst.msk [vmem:[#allocation2 + $0x7] sm:$0x1] %vm341_vm0, %v376_v7  ;;  %s332_s20 = scalar_lea.vmem [#allocation6], %s331_s25  ;;  %s3636_s27 = scalar_lea.sflag [#allocation7], %s331_s25 }
  0x3e   : > { %s335_s16 = scalar_lea.vmem %s4843_s2, %s334_s11  ;;  %s3648_s22 = sshll.u32 %s332_s20, 4  ;;  %s4801_s22 = int_to_ptr.vmem [resolvable:$true] %s3648_s22 }
  0x3f   : > { %v381_v62 = vld [vmem:[%s335_s16] sm:$0x1]  ;;  %s4280_s29 = smov [#allocation6]  }
  0x40   : > { %vm387_vm4 = vcmp.gt.f32.partialorder %v381_v62, 0.5  ;;  %s4875_s0 = smov %s4874_s1  ;;  %s4799_s13 = scalar_lea.hbm %s4874_s1, %s3807_s30 }
  0x41   : > { %v390_v3 = vsel %vm387_vm4, 1, %v4278_v2  ;;  %s4211_s15 = sshll.u32 %s4280_s29, 4  ;;  %s4212_s15 = int_to_ptr.vmem [resolvable:$false] %s4211_s15 }
  0x42   : > { %v391_v4 = vcombine.low %v390_v3, %v390_v3  ;;  %s4213_s11 = scalar_lea.vmem %s4212_s15, 32  ;;  %p4214_p10 = scmp.lt.s32.totalorder %s4801_s22, %s4212_s15 }
  0x44   : > { %v378_v9 = vld [vmem:[#allocation2] sm:$0xff]  ;;  %v398_v6 = vrot.slane %v391_v4, %v397_v5 }
  0x45   : > { %v4431_v10 = vadd.f32 %v379_v8, %v378_v9  ;;  %v385_v9 = vand.u32 127, %v382_v22 }
  0x46   : > { %v399_v7 = vcombine.low %v398_v6, %v398_v6 }
  0x47   : > { %v413_v11 = vsel %vm412_vm1, %v4431_v10, 0.0  ;;  %vm386_vm5 = vcmp.ge.s32.totalorder %v4452_v24, %v385_v9  ;;  %v4106_v9 = vld [vmem:[%s4848_s7 + $0x8] sm:$0xff]  }
  0x48   : > { %414 = vadd.xlane.f32.xlu0 %v413_v11  ;;  %v406_v8 = vrot.slane %v399_v7, %v397_v5 }
  0x4a   : > { %v407_v11 = vcombine.low %v406_v8, %v406_v8  ;;  %v4105_v8 = vld [vmem:[%s4848_s7] sm:$0xff]  }
  0x4c   : > { %vm408_vm6 = vcmp.ne.s32.totalorder %v407_v11, 0 }
  0x4d   : > { %vm409_vm7 = vmand %vm386_vm5, %vm408_vm6 }
  0xd5   : > { %v415_v12 = vpop.xlane.xlu0 %414 }
  0xd6   : > { %v417_v13 = vmul.f32 0.03125, %v415_v12  ;;  %v4279_v12 = vmov -1e+09  }
  0xd8   : > { %v418_v14 = vsub.f32 %v4431_v10, %v417_v13  ;;  %v4510_v13 = vsel %vm409_vm7, 0.0, %v4279_v12 }
  0xda   : > { %v419_v15 = vmul.f32 %v418_v14, %v418_v14 }
  0xdc   : > { %v420_v16 = vsel %vm412_vm1, %v419_v15, 0.0 }
  0xdd   : > { %421 = vadd.xlane.f32.xlu0 %v420_v16 }
 0x16a   : > { %v422_v20 = vpop.xlane.xlu0 %421 }
 0x16b   : > { %v423_v21 = vmul.f32 0.03125, %v422_v20 }
 0x16d   : > { %v424_v23 = vadd.f32 1e-05, %v423_v21 }
 0x16f   : > { %4133 = vrsqrt.f32 %v424_v23 }
 0x179   : > { %v4134_v29 = vpop.eup %4133 }
 0x17a   : > { %v426_v30 = vmul.f32 %v4134_v29, %v418_v14 }
 0x17c   : > { %v431_v32 = vmul.f32 %v430_v28, %v426_v30 }
 0x17e   : > { %v436_v33 = vadd.f32 %v435_v31, %v431_v32 }
 0x180   : > { %v437_v34 = vpack.c.bf16 %v436_v33, %v436_v33 }
 0x182   : > { %3886 = vmatmul.mubr.msk.bf16.vlgmr.msra.gmra.mrb[0].mxu0 %vm412_vm1, %v437_v34 }
 0x183   : > { %3906 = vmatprep.mubr.msk.f32.mxu0 %vm4276_vm2, %v4275_v18 }
 0x255   : > { %v495_v37 = vpop.f32.mrb[0].mxu0 }
 0x256   : > { %v3887_v38 = vpop.f32.mrb[1].mxu0  ;;  %v496_v39 = vadd.f32 %v495_v37, %v445_v36 }
 0x257   : > { %v498_v40 = vpop.f32.mrb[2].mxu0 }
 0x258   : > { %501 = vxpose.xlu1.b32.start.end [1/1] (short) (narrow) %v496_v39, 96  ;;  %v3888_v41 = vpop.f32.mrb[3].mxu0 }
 0x2d8   : > { %v517_v42 = vpop.trf.xlu1 }
 0x2d9   : > { %533 = vxpose.xlu0.b32.start.end [1/1] (short) (narrow) %v517_v42, 8 }
 0x2dc   : > { %v518_v43 = vpop.trf.xlu1 }
 0x2dd   : > { %565 = vxpose.xlu0.b32.start.end [1/1] (short) (narrow) %v518_v43, 8 }
 0x2e0   : > { %v519_v44 = vpop.trf.xlu1 }
 0x2e4   : > { %v520_v45 = vpop.trf.xlu1 }
 0x2e8   : > { %v521_v46 = vpop.trf.xlu1 }
 0x2e9   : > { %661 = vxpose.xlu1.b32.start.end [1/1] (short) (narrow) %v521_v46, 8 }
 0x2ec   : > { %v522_v47 = vpop.trf.xlu1 }
 0x2ed   : > { %693 = vxpose.xlu1.b32.start.end [1/1] (short) (narrow) %v522_v47, 8 }
 0x2f0   : > { %v523_v48 = vpop.trf.xlu1 }
 0x2f1   : > { %725 = vxpose.xlu1.b32.start.end [1/1] (short) (narrow) %v523_v48, 8 }
 0x2f4   : > { %v524_v49 = vpop.trf.xlu1 }
 0x2f5   : > { %597 = vxpose.xlu1.b32.start.end [1/1] (short) (narrow) %v519_v44, 8  ;;  %757 = vxpose.xlu0.b32.start.end [1/1] (short) (narrow) %v524_v49, 8 }
 0x2f8   : > { %v4474_v50 = vpop.trf.xlu1 }
 0x2f9   : > { %629 = vxpose.xlu0.b32.start.end [1/1] (short) (narrow) %v520_v45, 8 }
 0x2fc   : > { %v4476_v51 = vpop.trf.xlu1 }
 0x300   : > { %v4478_v52 = vpop.trf.xlu1 }
 0x304   : > { %v4480_v53 = vpop.trf.xlu1 }
 0x359   : > { %v549_v54 = vpop.trf.xlu0 }
 0x35d   : > { %v581_v57 = vpop.trf.xlu0 }
 0x369   : > { %v677_v55 = vpop.trf.xlu1 }
 0x36a   : > { %3890 = vmatpush3.xpose.msk.msra.mxu1 %vm917_vm3, %v677_v55 }
 0x36b   : > { %3894 = vmatprep.subr.mxu1 %v4275_v18 }
 0x36d   : > { %3892 = vmatmul.mubr.msk.f32.vlgmr.msra.gmra.mrb[0].mxu1 %vm917_vm3, %v549_v54  ;;  %v709_v56 = vpop.trf.xlu1 }
 0x36e   : > { %3895 = vmatpush3.xpose.msk.msra.mxu1 %vm917_vm3, %v709_v56  ;;  %3896 = vmatprep.mubr.msk.f32.mxu1 %vm4276_vm2, %v4275_v18 }
 0x36f   : > { %3899 = vmatprep.subr.mxu1 %v4275_v18 }
 0x371   : > { %3897 = vmatmul.mubr.msk.f32.vlgmr.msra.gmra.mrb[2].mxu1 %vm917_vm3, %v581_v57  ;;  %v741_v58 = vpop.trf.xlu1 }
 0x372   : > { %3900 = vmatpush3.xpose.msk.msra.mxu1 %vm917_vm3, %v741_v58  ;;  %3901 = vmatprep.mubr.msk.f32.mxu1 %vm4276_vm2, %v4275_v18 }
 0x373   : > { %3909 = vmatprep.subr.mxu1 %v4275_v18 }
 0x375   : > { %v773_v59 = vpop.trf.xlu0  ;;  %v613_v60 = vpop.trf.xlu1 }
 0x376   : > { %3902 = vmatmul.mubr.msk.f32.vlgmr.msra.gmra.mrb[4].mxu1 %vm917_vm3, %v613_v60  ;;  %3905 = vmatpush3.xpose.msk.msra.mxu0 %vm917_vm3, %v773_v59 }
 0x377   : > { %3914 = vmatprep.subr.mxu0 %v4275_v18  ;;  %3911 = vmatprep.mubr.msk.f32.mxu1 %vm4276_vm2, %v4275_v18 }
 0x379   : > { %v645_v61 = vpop.trf.xlu0 }
 0x37a   : > { %3907 = vmatmul.mubr.msk.f32.vlgmr.msra.gmra.mrb[4].mxu0 %vm917_vm3, %v645_v61 }
 0x37b   : > { %3916 = vmatprep.mubr.msk.f32.mxu0 %vm4276_vm2, %v4275_v18 }
 0x440   : > { %v990_v14 = vpop.f32.mrb[0].mxu1 }
 0x441   : > { %v991_v15 = vadd.f32 %v990_v14, %v4510_v13  ;;  %v3893_v16 = vpop.f32.mrb[1].mxu1 }
 0x443   : > { %v1222_v17 = vmul.f32 1.442695, %v991_v15 }
 0x444   : > { %v1066_v19 = vpop.f32.mrb[2].mxu1 }
 0x445   : > { %4135 = vpow2.f32 %v1222_v17  ;;  %v1067_v20 = vadd.f32 %v1066_v19, %v4510_v13  ;;  %v3898_v21 = vpop.f32.mrb[3].mxu1  ;;  %v1713_v19 = vsub.s32 3, %v4452_v24 }
 0x447   : > { %v1224_v23 = vmul.f32 1.442695, %v1067_v20  ;;  %v1714_v20 = vrot.slane %v4458_v26, %v1713_v19 }
 0x449   : > { %4137 = vpow2.f32 %v1224_v23  ;;  %v1142_v22 = vpop.f32.mrb[4].mxu1 }
 0x44a   : > { %v1143_v28 = vadd.f32 %v1142_v22, %v4510_v13  ;;  %v3903_v29 = vpop.f32.mrb[5].mxu1 }
 0x44c   : > { %v1226_v30 = vmul.f32 1.442695, %v1143_v28 }
 0x44d   : > { %v1218_v31 = vpop.f32.mrb[4].mxu0 }
 0x44e   : > { %4139 = vpow2.f32 %v1226_v30  ;;  %v1219_v32 = vadd.f32 %v1218_v31, %v4510_v13  ;;  %v3908_v33 = vpop.f32.mrb[5].mxu0 }
 0x44f   : > { %v4136_v34 = vpop.eup %4135 }
 0x450   : > { %v1228_v36 = vmul.f32 1.442695, %v1219_v32  ;;  %v1230_v37 = vsel %vm917_vm3, %v4136_v34, 0.0 }
 0x451   : > { %1231 = vadd.xlane.f32.xlu1 %v1230_v37 }
 0x452   : > { %4141 = vpow2.f32 %v1228_v36 }
 0x453   : > { %v4138_v38 = vpop.eup %4137 }
 0x454   : > { %v1233_v39 = vsel %vm917_vm3, %v4138_v38, 0.0 }
 0x455   : > { %1234 = vadd.xlane.f32.xlu0 %v1233_v39 }
 0x458   : > { %v4140_v40 = vpop.eup %4139 }
 0x459   : > { %v1236_v41 = vsel %vm917_vm3, %v4140_v40, 0.0 }
 0x45a   : > { %1237 = vadd.xlane.f32.xlu1 %v1236_v41 }
 0x45c   : > { %v4142_v42 = vpop.eup %4141 }
 0x45d   : > { %v1239_v43 = vsel %vm917_vm3, %v4142_v42, 0.0 }
 0x45e   : > { %1240 = vadd.xlane.f32.xlu1 %v1239_v43  ;;  %v1791_v43 = vsub.s32 5, %v4452_v24 }
 0x482   : > { %821 = vxpose.xlu0.b32.start.end [1/1] (short) (narrow) %v4476_v51, 8 }
 0x486   : > { %853 = vxpose.xlu0.b32.start.end [1/1] (short) (narrow) %v4478_v52, 8 }
 0x48a   : > { %885 = vxpose.xlu0.b32.start.end [1/1] (short) (narrow) %v4480_v53, 8 }
 0x491   : > { %789 = vxpose.xlu1.b32.start.end [1/1] (short) (narrow) %v4474_v50, 8 }
 0x4de   : > { %v1232_v44 = vpop.xlane.xlu1 %1231 }
 0x4df   : > { %v1242_v55 = vadd.f32 1e-06, %v1232_v44 }
 0x4e2   : > { %v1235_v45 = vpop.xlane.xlu0 %1234 }
 0x4e3   : > { %v1243_v47 = vadd.f32 1e-06, %v1235_v45 }
 0x4e5   : > { %4143 = vrcp.f32 %v1243_v47  ;;  %v1792_v47 = vrot.slane %v4458_v26, %v1791_v43 }
 0x4e7   : > { %v1238_v46 = vpop.xlane.xlu1 %1237 }
 0x4e8   : > { %v1244_v51 = vadd.f32 1e-06, %v1238_v46 }
 0x4eb   : > { %v1241_v48 = vpop.xlane.xlu1 %1240 }
 0x4ec   : > { %v1245_v49 = vadd.f32 1e-06, %v1241_v48 }
 0x4ee   : > { %4145 = vrcp.f32 %v1245_v49 }
 0x4ef   : > { %v4144_v54 = vpop.eup %4143  ;;  %4147 = vrcp.f32 %v1242_v55  ;;  %v4109_v55 = vld [vmem:[%s4850_s9] sm:$0xff]  }
 0x4f0   : > { %v1251_v57 = vmul.f32 %v4144_v54, %v4138_v38  ;;  %4149 = vrcp.f32 %v1244_v51  ;;  %v4107_v38 = vld [vmem:[%s4849_s8] sm:$0xff]   ;;  %v4112_v51 = vld [vmem:[%s4850_s9 + $0x18] sm:$0xff]  }
 0x4f8   : > { %v4146_v52 = vpop.eup %4145 }
 0x4f9   : > { %v1253_v58 = vmul.f32 %v4146_v52, %v4142_v42  ;;  %v4148_v59 = vpop.eup %4147  ;;  %v1786_v42 = vsub.s32 4, %v4452_v24  ;;  %v4114_v52 = vld [vmem:[%s4850_s9 + $0x28] sm:$0xff]  }
 0x4fa   : > { %v1250_v61 = vmul.f32 %v4148_v59, %v4136_v34  ;;  %v4150_v62 = vpop.eup %4149  ;;  %v1801_v59 = vsub.s32 6, %v4452_v24 }
 0x4fb   : > { %v1252_v63 = vmul.f32 %v4150_v62, %v4140_v40  ;;  %v1787_v44 = vrot.slane %v4458_v26, %v1786_v42 }
 0x502   : > { %v837_v56 = vpop.trf.xlu0 }
 0x503   : > { %3915 = vmatpush3.msra.mxu0 %v837_v56  ;;  %v4110_v56 = vld [vmem:[%s4850_s9 + $0x8] sm:$0xff]  }
 0x504   : > { %3917 = vmatmul.mubr.msk.f32.vlgmr.msra.gmra.mrb[6].mxu0 %vm917_vm3, %v1251_v57  ;;  %3924 = vmatprep.subr.mxu0 %v4275_v18  ;;  %v4111_v57 = vld [vmem:[%s4850_s9 + $0x10] sm:$0xff]  }
 0x505   : > { %3926 = vmatprep.mubr.msk.f32.mxu0 %vm4276_vm2, %v4275_v18 }
 0x506   : > { %v869_v50 = vpop.trf.xlu0 }
 0x50a   : > { %v901_v53 = vpop.trf.xlu0 }
 0x50b   : > { %3925 = vmatpush3.msra.mxu0 %v901_v53  ;;  %v4115_v53 = vld [vmem:[%s4850_s9 + $0x30] sm:$0xff]  }
 0x50c   : > { %3927 = vmatmul.mubr.msk.f32.vlgmr.msra.gmra.mrb[8].mxu0 %vm917_vm3, %v1253_v58  ;;  %3929 = vmatprep.subr.bf16.mxu0 %v4275_v18  ;;  %v4116_v58 = vld [vmem:[%s4850_s9 + $0x38] sm:$0xff]  }
 0x50d   : > { %3933 = vmatprep.mubr.msk.bf16.mxu0 %vm4276_vm2, %v4275_v18  ;;  %3930 = vmatpush3.bf16.msra.mxu0 %v4105_v8 }
 0x50e   : > { %3931 = vmatprep.subr.bf16.mxu0 %v4275_v18 }
 0x511   : > { %v805_v60 = vpop.trf.xlu1  ;;  %3932 = vmatpush3.bf16.msra.mxu0 %v4106_v9  ;;  %v1885_v9 = vsub.s32 7, %v4452_v24 }
 0x512   : > { %3910 = vmatpush3.msra.mxu1 %v805_v60  ;;  %3937 = vmatprep.subr.bf16.mxu0 %v4275_v18  ;;  %v1802_v60 = vrot.slane %v4458_v26, %v1801_v59 }
 0x513   : > { %3912 = vmatmul.mubr.msk.f32.vlgmr.msra.gmra.mrb[6].mxu1 %vm917_vm3, %v1250_v61  ;;  %3919 = vmatprep.subr.mxu1 %v4275_v18 }
 0x514   : > { %3920 = vmatpush3.msra.mxu1 %v869_v50  ;;  %3921 = vmatprep.mubr.msk.f32.mxu1 %vm4276_vm2, %v4275_v18  ;;  %v4113_v50 = vld [vmem:[%s4850_s9 + $0x20] sm:$0xff]  }
 0x515   : > { %3945 = vmatprep.subr.bf16.mxu1 %v4275_v18 }
 0x517   : > { %3922 = vmatmul.mubr.msk.f32.vlgmr.msra.gmra.mrb[8].mxu1 %vm917_vm3, %v1252_v63 }
 0x518   : > { %3961 = vmatprep.mubr.msk.bf16.mxu1 %vm4276_vm2, %v4275_v18  ;;  %3946 = vmatpush3.bf16.msra.mxu1 %v4109_v55 }
 0x519   : > { %3947 = vmatprep.subr.bf16.mxu1 %v4275_v18 }
 0x51c   : > { %3948 = vmatpush3.bf16.msra.mxu1 %v4110_v56 }
 0x51d   : > { %3949 = vmatprep.subr.bf16.mxu1 %v4275_v18 }
 0x520   : > { %3950 = vmatpush3.bf16.msra.mxu1 %v4111_v57 }
 0x521   : > { %3951 = vmatprep.subr.bf16.mxu1 %v4275_v18 }
 0x524   : > { %3952 = vmatpush3.bf16.msra.mxu1 %v4112_v51 }
 0x525   : > { %3953 = vmatprep.subr.bf16.mxu1 %v4275_v18 }
 0x528   : > { %3954 = vmatpush3.bf16.msra.mxu1 %v4113_v50 }
 0x529   : > { %3955 = vmatprep.subr.bf16.mxu1 %v4275_v18 }
 0x52c   : > { %3956 = vmatpush3.bf16.msra.mxu1 %v4114_v52 }
 0x52d   : > { %3957 = vmatprep.subr.bf16.mxu1 %v4275_v18 }
 0x530   : > { %3958 = vmatpush3.bf16.msra.mxu1 %v4115_v53 }
 0x531   : > { %3959 = vmatprep.subr.bf16.mxu1 %v4275_v18 }
 0x534   : > { %3960 = vmatpush3.bf16.msra.mxu1 %v4116_v58 }
 0x535   : > { %4003 = vmatprep.subr.mxu1 %v4275_v18 }
 0x5d7   : > { %v1396_v0 = vpop.f32.mrb[6].mxu0 }
 0x5d8   : > { %1578 = vxpose.xlu0.b32.start.end [1/1] (short) (narrow) %v1396_v0, 8  ;;  %v3918_v1 = vpop.f32.mrb[7].mxu0 }
 0x5df   : > { %v1542_v2 = vpop.f32.mrb[8].mxu0 }
 0x5e0   : > { %1642 = vxpose.xlu0.b32.start.end [1/1] (short) (narrow) %v1542_v2, 8  ;;  %v3928_v3 = vpop.f32.mrb[9].mxu0 }
 0x5e6   : > { %v1323_v4 = vpop.f32.mrb[6].mxu1 }
 0x5e7   : > { %1546 = vxpose.xlu1.b32.start.end [1/1] (short) (narrow) %v1323_v4, 8  ;;  %v3913_v5 = vpop.f32.mrb[7].mxu1 }
 0x5ea   : > { %v1469_v6 = vpop.f32.mrb[8].mxu1 }
 0x5eb   : > { %1610 = vxpose.xlu1.b32.start.end [1/1] (short) (narrow) %v1469_v6, 8  ;;  %v3923_v7 = vpop.f32.mrb[9].mxu1 }
 0x658   : > { %v1594_v12 = vpop.trf.xlu0 }
 0x660   : > { %v1658_v15 = vpop.trf.xlu0 }
 0x667   : > { %v1562_v11 = vpop.trf.xlu1 }
 0x668   : > { %1674 = vxpose.xlu1.b32.start [1/4] (short) (narrow) %v1562_v11, 8  ;;  %v1886_v11 = vrot.slane %v4458_v26, %v1885_v9  ;;  %v4117_v26 = vld [vmem:[%s4847_s6 + $0x10] sm:$0xff]  }
 0x66b   : > { %v1626_v14 = vpop.trf.xlu1 }
 0x66c   : > { %1675 = vxpose.xlu1.b32.cont [2/4] (short) (narrow) %v1594_v12, 8 }
 0x670   : > { %1676 = vxpose.xlu1.b32.cont [3/4] (short) (narrow) %v1626_v14, 8 }
 0x674   : > { %1677 = vxpose.xlu1.b32.end [4/4] (short) (narrow) %v1658_v15, 8 }
 0x6e8   : > { %v1690_v16 = vpop.trf.xlu1 }
 0x6e9   : > { %v1706_v17 = vpack.c.bf16 %v1690_v16, %v1690_v16 }
 0x6eb   : > { %3934 = vmatmul.mubr.msk.bf16.vlgmr.msra.gmra.mrb[12].mxu0 %vm412_vm1, %v1706_v17 }
 0x6ec   : > { %3941 = vmatprep.mubr.msk.bf16.mxu0 %vm4276_vm2, %v4275_v18  ;;  %3938 = vmatpush3.bf16.msra.mxu0 %v4107_v38 }
 0x6ed   : > { %3939 = vmatprep.subr.bf16.mxu0 %v4275_v18 }
 0x7be   : > { %v1764_v21 = vpop.f32.mrb[12].mxu0 }
 0x7bf   : > { %v1765_v23 = vadd.f32 %v1764_v21, %v1714_v20  ;;  %v3935_v22 = vpop.f32.mrb[13].mxu0 }
 0x7c0   : > { %v1767_v28 = vpop.f32.mrb[14].mxu0 }
 0x7c1   : > { %v4556_v29 = vadd.f32 %v1765_v23, %v4431_v10  ;;  %v3936_v30 = vpop.f32.mrb[15].mxu0  ;;  %v4108_v10 = vld [vmem:[%s4849_s8 + $0x8] sm:$0xff]  }
 0x7c2   : > { %3940 = vmatpush3.bf16.msra.mxu0 %v4108_v10 }
 0x7c3   : > { %v1771_v31 = vsel %vm412_vm1, %v4556_v29, 0.0  ;;  %3965 = vmatprep.subr.bf16.mxu0 %v4275_v18 }
 0x7c4   : > { %1772 = vadd.xlane.f32.xlu0 %v1771_v31 }
 0x851   : > { %v1773_v32 = vpop.xlane.xlu0 %1772 }
 0x852   : > { %v1774_v33 = vmul.f32 0.03125, %v1773_v32 }
 0x854   : > { %v1775_v34 = vsub.f32 %v4556_v29, %v1774_v33 }
 0x856   : > { %v1776_v36 = vmul.f32 %v1775_v34, %v1775_v34 }
 0x858   : > { %v1777_v37 = vsel %vm412_vm1, %v1776_v36, 0.0  ;;  %v4641_v36 = vld [vmem:[%s4846_s5 + $0x8] sm:$0xff] }
 0x859   : > { %1778 = vadd.xlane.f32.xlu1 %v1777_v37  ;;  %v1994_v37 = vrot.slane %v4641_v36, %v429_v25  ;;  %v1999_v10 = vrot.slane %v4641_v36, %v434_v27 }
 0x8e6   : > { %v1779_v39 = vpop.xlane.xlu1 %1778 }
 0x8e7   : > { %v1780_v40 = vmul.f32 0.03125, %v1779_v39 }
 0x8e9   : > { %v1781_v41 = vadd.f32 1e-05, %v1780_v40 }
 0x8eb   : > { %4151 = vrsqrt.f32 %v1781_v41 }
 0x8f5   : > { %v4152_v45 = vpop.eup %4151 }
 0x8f6   : > { %v1783_v46 = vmul.f32 %v4152_v45, %v1775_v34  ;;  %v2010_v45 = vrot.slane %v4641_v36, %v444_v35 }
 0x8f8   : > { %v1788_v48 = vmul.f32 %v1787_v44, %v1783_v46 }
 0x8fa   : > { %v1793_v49 = vadd.f32 %v1792_v47, %v1788_v48 }
 0x8fc   : > { %v1794_v54 = vpack.c.bf16 %v1793_v49, %v1793_v49 }
 0x8fe   : > { %3942 = vmatmul.mubr.msk.bf16.vlgmr.msra.gmra.mrb[16].mxu0 %vm412_vm1, %v1794_v54 }
 0x8ff   : > { %3969 = vmatprep.mubr.msk.bf16.mxu0 %vm4276_vm2, %v4275_v18  ;;  %3966 = vmatpush3.bf16.msra.mxu0 %v4117_v26 }
 0x900   : > { %3967 = vmatprep.subr.bf16.mxu0 %v4275_v18 }
 0x9d1   : > { %v1852_v61 = vpop.f32.mrb[16].mxu0 }
 0x9d2   : > { %v1853_v62 = vadd.f32 %v1852_v61, %v1802_v60  ;;  %v3943_v63 = vpop.f32.mrb[17].mxu0 }
 0x9d3   : > { %v1855_v0 = vpop.f32.mrb[18].mxu0 }
 0x9d4   : > { %v3734_v1 = vmul.f32 -1.702, %v1853_v62  ;;  %v3944_v2 = vpop.f32.mrb[19].mxu0 }
 0x9d6   : > { %v1860_v3 = vmul.f32 1.442695, %v3734_v1 }
 0x9d8   : > { %4153 = vpow2.f32 %v1860_v3 }
 0x9e2   : > { %v4154_v4 = vpop.eup %4153 }
 0x9e3   : > { %v1862_v5 = vadd.f32 1.0, %v4154_v4 }
 0x9e5   : > { %4155 = vrcp.f32 %v1862_v5 }
 0x9ef   : > { %v4156_v6 = vpop.eup %4155 }
 0x9f0   : > { %v1865_v7 = vmul.f32 %v4156_v6, %v1853_v62 }
 0x9f2   : > { %v1866_v8 = vpack.c.bf16 %v1865_v7, %v1865_v7 }
 0x9f4   : > { %3962 = vmatmul.mubr.bf16.vlgmr.msra.gmra.mrb[12].mxu1 %v1866_v8 }
 0x9f5   : > { %4005 = vmatprep.mubr.msk.f32.mxu1 %vm4276_vm2, %v4275_v18 }
 0xac7   : > { %v1969_v12 = vpop.f32.mrb[12].mxu1 }
 0xac8   : > { %v1970_v14 = vadd.f32 %v1969_v12, %v1886_v11  ;;  %v3963_v15 = vpop.f32.mrb[13].mxu1 }
 0xac9   : > { %v1972_v16 = vpop.f32.mrb[14].mxu1 }
 0xaca   : > { %v4624_v17 = vadd.f32 %v1970_v14, %v4556_v29  ;;  %v3964_v20 = vpop.f32.mrb[15].mxu1  ;;  %v4118_v29 = vld [vmem:[%s4847_s6 + $0x18] sm:$0xff]  }
 0xacb   : > { %3968 = vmatpush3.bf16.msra.mxu0 %v4118_v29 }
 0xacc   : > { %v1978_v21 = vsel %vm412_vm1, %v4624_v17, 0.0  ;;  %3973 = vmatprep.subr.mxu0 %v4275_v18 }
 0xacd   : > { %1979 = vadd.xlane.f32.xlu0 %v1978_v21 }
 0xb5a   : > { %v1980_v23 = vpop.xlane.xlu0 %1979 }
 0xb5b   : > { %v1981_v22 = vmul.f32 0.03125, %v1980_v23 }
 0xb5d   : > { %v1982_v28 = vsub.f32 %v4624_v17, %v1981_v22 }
 0xb5f   : > { %v1983_v30 = vmul.f32 %v1982_v28, %v1982_v28 }
 0xb61   : > { %v1984_v31 = vsel %vm412_vm1, %v1983_v30, 0.0 }
 0xb62   : > { %1985 = vadd.xlane.f32.xlu0 %v1984_v31 }
 0xbef   : > { %v1986_v32 = vpop.xlane.xlu0 %1985 }
 0xbf0   : > { %v1987_v33 = vmul.f32 0.03125, %v1986_v32 }
 0xbf2   : > { %v1988_v34 = vadd.f32 1e-05, %v1987_v33 }
 0xbf4   : > { %4157 = vrsqrt.f32 %v1988_v34 }
 0xbfe   : > { %v4158_v38 = vpop.eup %4157 }
 0xbff   : > { %v1990_v39 = vmul.f32 %v4158_v38, %v1982_v28 }
 0xc01   : > { %v1995_v40 = vmul.f32 %v1994_v37, %v1990_v39 }
 0xc03   : > { %v2000_v41 = vadd.f32 %v1999_v10, %v1995_v40 }
 0xc05   : > { %v2001_v44 = vpack.c.bf16 %v2000_v41, %v2000_v41 }
 0xc07   : > { %3970 = vmatmul.mubr.msk.bf16.vlgmr.msra.gmra.mrb[20].mxu0 %vm412_vm1, %v2001_v44 }
 0xc08   : > { %3975 = vmatprep.mubr.msk.f32.mxu0 %vm4276_vm2, %v4275_v18 }
 0xcda   : > { %v2060_v46 = vpop.f32.mrb[20].mxu0 }
 0xcdb   : > { %v2061_v25 = vadd.f32 %v2060_v46, %v2010_v45  ;;  %v3971_v47 = vpop.f32.mrb[21].mxu0 }
 0xcdc   : > { %v2063_v48 = vpop.f32.mrb[22].mxu0 }
 0xcdd   : > { %2066 = vxpose.xlu1.b32.start.end [1/1] (short) (narrow) %v2061_v25, 96  ;;  %v3972_v49 = vpop.f32.mrb[23].mxu0 }
 0xd5d   : > { %v2082_v27 = vpop.trf.xlu1 }
 0xd5e   : > { %2098 = vxpose.xlu0.b32.start.end [1/1] (short) (narrow) %v2082_v27, 8 }
 0xd61   : > { %v2083_v54 = vpop.trf.xlu1 }
 0xd62   : > { %2130 = vxpose.xlu1.b32.start.end [1/1] (short) (narrow) %v2083_v54, 8 }
 0xd65   : > { %v2084_v55 = vpop.trf.xlu1 }
 0xd66   : > { %2162 = vxpose.xlu0.b32.start.end [1/1] (short) (narrow) %v2084_v55, 8 }
 0xd69   : > { %v2085_v56 = vpop.trf.xlu1 }
 0xd6d   : > { %v2086_v57 = vpop.trf.xlu1 }
 0xd6e   : > { %2226 = vxpose.xlu0.b32.start.end [1/1] (short) (narrow) %v2086_v57, 8 }
 0xd71   : > { %v2087_v51 = vpop.trf.xlu1 }
 0xd72   : > { %2258 = vxpose.xlu0.b32.start.end [1/1] (short) (narrow) %v2087_v51, 8 }
 0xd75   : > { %v2088_v50 = vpop.trf.xlu1 }
 0xd76   : > { %2290 = vxpose.xlu0.b32.start.end [1/1] (short) (narrow) %v2088_v50, 8 }
 0xd79   : > { %v2089_v35 = vpop.trf.xlu1 }
 0xd7a   : > { %2322 = vxpose.xlu0.b32.start.end [1/1] (short) (narrow) %v2089_v35, 8 }
 0xd7d   : > { %v2090_v52 = vpop.trf.xlu1 }
 0xd7e   : > { %2194 = vxpose.xlu0.b32.start.end [1/1] (short) (narrow) %v2085_v56, 8 }
 0xd81   : > { %v2091_v53 = vpop.trf.xlu1 }
 0xd85   : > { %v2092_v60 = vpop.trf.xlu1 }
 0xd89   : > { %v2093_v62 = vpop.trf.xlu1 }
 0xdde   : > { %v2114_v58 = vpop.trf.xlu0 }
 0xde2   : > { %v2146_v1 = vpop.trf.xlu1 }
 0xde6   : > { %v2178_v61 = vpop.trf.xlu0 }
 0xdee   : > { %v2242_v63 = vpop.trf.xlu0 }
 0xdef   : > { %3974 = vmatpush3.xpose.msk.msra.mxu0 %vm917_vm3, %v2242_v63 }
 0xdf0   : > { %3978 = vmatprep.subr.mxu0 %v4275_v18 }
 0xdf2   : > { %3976 = vmatmul.mubr.msk.f32.vlgmr.msra.gmra.mrb[10].mxu0 %vm917_vm3, %v2114_v58  ;;  %v2274_v0 = vpop.trf.xlu0 }
 0xdf3   : > { %3979 = vmatpush3.xpose.msk.msra.mxu0 %vm917_vm3, %v2274_v0  ;;  %3980 = vmatprep.mubr.msk.f32.mxu0 %vm4276_vm2, %v4275_v18 }
 0xdf4   : > { %3983 = vmatprep.subr.mxu0 %v4275_v18 }
 0xdf6   : > { %v2306_v2 = vpop.trf.xlu0  ;;  %3981 = vmatmul.mubr.msk.f32.vlgmr.msra.gmra.mrb[24].mxu0 %vm917_vm3, %v2146_v1 }
 0xdf7   : > { %3984 = vmatpush3.xpose.msk.msra.mxu0 %vm917_vm3, %v2306_v2  ;;  %3985 = vmatprep.mubr.msk.f32.mxu0 %vm4276_vm2, %v4275_v18  ;;  %v4119_v2 = vld [vmem:[%s4848_s7 + $0x10] sm:$0xff]  }
 0xdf8   : > { %3988 = vmatprep.subr.mxu0 %v4275_v18 }
 0xdfa   : > { %v2338_v3 = vpop.trf.xlu0  ;;  %3986 = vmatmul.mubr.msk.f32.vlgmr.msra.gmra.mrb[26].mxu0 %vm917_vm3, %v2178_v61 }
 0xdfb   : > { %3989 = vmatpush3.xpose.msk.msra.mxu0 %vm917_vm3, %v2338_v3  ;;  %3990 = vmatprep.mubr.msk.f32.mxu0 %vm4276_vm2, %v4275_v18  ;;  %v4120_v3 = vld [vmem:[%s4848_s7 + $0x18] sm:$0xff]  }
 0xdfc   : > { %3993 = vmatprep.subr.mxu0 %v4275_v18 }
 0xdfe   : > { %v2210_v4 = vpop.trf.xlu0 }
 0xdff   : > { %3991 = vmatmul.mubr.msk.f32.vlgmr.msra.gmra.mrb[28].mxu0 %vm917_vm3, %v2210_v4 }
 0xe00   : > { %3995 = vmatprep.mubr.msk.f32.mxu0 %vm4276_vm2, %v4275_v18 }
 0xec5   : > { %v2554_v5 = vpop.f32.mrb[10].mxu0 }
 0xec6   : > { %v2555_v6 = vadd.f32 %v2554_v5, %v4510_v13  ;;  %v3977_v7 = vpop.f32.mrb[11].mxu0 }
 0xec8   : > { %v2786_v8 = vmul.f32 1.442695, %v2555_v6 }
 0xec9   : > { %v2630_v11 = vpop.f32.mrb[24].mxu0 }
 0xeca   : > { %4159 = vpow2.f32 %v2786_v8  ;;  %v2631_v12 = vadd.f32 %v2630_v11, %v4510_v13  ;;  %v3982_v14 = vpop.f32.mrb[25].mxu0 }
 0xecc   : > { %v2788_v15 = vmul.f32 1.442695, %v2631_v12  ;;  %v3279_v12 = vrot.slane %v4641_v36, %v1713_v19  ;;  %v4121_v19 = vld [vmem:[%s4849_s8 + $0x10] sm:$0xff]  }
 0xecd   : > { %v2706_v16 = vpop.f32.mrb[26].mxu0 }
 0xece   : > { %4161 = vpow2.f32 %v2788_v15  ;;  %v2707_v20 = vadd.f32 %v2706_v16, %v4510_v13  ;;  %v3987_v21 = vpop.f32.mrb[27].mxu0 }
 0xed0   : > { %v2790_v23 = vmul.f32 1.442695, %v2707_v20 }
 0xed2   : > { %4163 = vpow2.f32 %v2790_v23  ;;  %v2782_v22 = vpop.f32.mrb[28].mxu0 }
 0xed3   : > { %v2783_v28 = vadd.f32 %v2782_v22, %v4510_v13  ;;  %v3992_v30 = vpop.f32.mrb[29].mxu0 }
 0xed4   : > { %v4160_v31 = vpop.eup %4159 }
 0xed5   : > { %v2792_v26 = vmul.f32 1.442695, %v2783_v28  ;;  %v2794_v29 = vsel %vm917_vm3, %v4160_v31, 0.0 }
 0xed6   : > { %2795 = vadd.xlane.f32.xlu0 %v2794_v29 }
 0xed7   : > { %4165 = vpow2.f32 %v2792_v26 }
 0xed8   : > { %v4162_v32 = vpop.eup %4161 }
 0xed9   : > { %v2797_v33 = vsel %vm917_vm3, %v4162_v32, 0.0 }
 0xeda   : > { %2798 = vadd.xlane.f32.xlu1 %v2797_v33 }
 0xedc   : > { %v4164_v34 = vpop.eup %4163 }
 0xedd   : > { %v2800_v37 = vsel %vm917_vm3, %v4164_v34, 0.0 }
 0xede   : > { %2801 = vadd.xlane.f32.xlu0 %v2800_v37  ;;  %v3352_v37 = vrot.slane %v4641_v36, %v1786_v42  ;;  %v4124_v42 = vld [vmem:[%s4850_s9 + $0x48] sm:$0xff]  }
 0xee1   : > { %v4166_v38 = vpop.eup %4165 }
 0xee2   : > { %v2803_v10 = vsel %vm917_vm3, %v4166_v38, 0.0 }
 0xee3   : > { %2804 = vadd.xlane.f32.xlu0 %v2803_v10 }
 0xf0d   : > { %2386 = vxpose.xlu1.b32.start.end [1/1] (short) (narrow) %v2091_v53, 8 }
 0xf10   : > { %2354 = vxpose.xlu0.b32.start.end [1/1] (short) (narrow) %v2090_v52, 8 }
 0xf14   : > { %2418 = vxpose.xlu0.b32.start.end [1/1] (short) (narrow) %v2092_v60, 8 }
 0xf18   : > { %2450 = vxpose.xlu0.b32.start.end [1/1] (short) (narrow) %v2093_v62, 8 }
 0xf63   : > { %v2796_v13 = vpop.xlane.xlu0 %2795 }
 0xf64   : > { %v2806_v40 = vadd.f32 1e-06, %v2796_v13  ;;  %v3357_v13 = vrot.slane %v4641_v36, %v1791_v43  ;;  %v4125_v43 = vld [vmem:[%s4850_s9 + $0x50] sm:$0xff]  }
 0xf66   : > { %4167 = vrcp.f32 %v2806_v40 }
 0xf67   : > { %v2799_v41 = vpop.xlane.xlu1 %2798 }
 0xf68   : > { %v2807_v44 = vadd.f32 1e-06, %v2799_v41 }
 0xf6a   : > { %4169 = vrcp.f32 %v2807_v44  ;;  %v4123_v44 = vld [vmem:[%s4850_s9 + $0x40] sm:$0xff]  }
 0xf6b   : > { %v2802_v39 = vpop.xlane.xlu0 %2801 }
 0xf6c   : > { %v2808_v45 = vadd.f32 1e-06, %v2802_v39 }
 0xf6e   : > { %4171 = vrcp.f32 %v2808_v45  ;;  %v4126_v45 = vld [vmem:[%s4850_s9 + $0x58] sm:$0xff]  }
 0xf70   : > { %v2805_v46 = vpop.xlane.xlu0 %2804  ;;  %v4168_v47 = vpop.eup %4167 }
 0xf71   : > { %v2809_v25 = vadd.f32 1e-06, %v2805_v46  ;;  %v2814_v27 = vmul.f32 %v4168_v47, %v4160_v31  ;;  %v4127_v46 = vld [vmem:[%s4850_s9 + $0x60] sm:$0xff]   ;;  %v4129_v47 = vld [vmem:[%s4850_s9 + $0x70] sm:$0xff]  }
 0xf73   : > { %4173 = vrcp.f32 %v2809_v25  ;;  %v4128_v25 = vld [vmem:[%s4850_s9 + $0x68] sm:$0xff]  }
 0xf74   : > { %v4170_v48 = vpop.eup %4169 }
 0xf75   : > { %v2815_v57 = vmul.f32 %v4170_v48, %v4162_v32  ;;  %v4130_v48 = vld [vmem:[%s4850_s9 + $0x78] sm:$0xff]  }
 0xf78   : > { %v4172_v55 = vpop.eup %4171 }
 0xf79   : > { %v2816_v51 = vmul.f32 %v4172_v55, %v4164_v34 }
 0xf7d   : > { %v4174_v50 = vpop.eup %4173 }
 0xf7e   : > { %v2817_v52 = vmul.f32 %v4174_v50, %v4166_v38 }
 0xf8d   : > { %v2402_v54 = vpop.trf.xlu1 }
 0xf90   : > { %v2370_v49 = vpop.trf.xlu0 }
 0xf91   : > { %3994 = vmatpush3.msra.mxu0 %v2370_v49  ;;  %v3368_v49 = vrot.slane %v4641_v36, %v1801_v59  ;;  %v3453_v59 = vrot.slane %v4641_v36, %v1885_v9 }
 0xf92   : > { %3996 = vmatmul.mubr.msk.f32.vlgmr.msra.gmra.mrb[30].mxu0 %vm917_vm3, %v2814_v27  ;;  %3998 = vmatprep.subr.mxu0 %v4275_v18 }
 0xf93   : > { %3999 = vmatpush3.msra.mxu0 %v2402_v54  ;;  %4000 = vmatprep.mubr.msk.f32.mxu0 %vm4276_vm2, %v4275_v18 }
 0xf94   : > { %v2434_v56 = vpop.trf.xlu0  ;;  %4008 = vmatprep.subr.mxu0 %v4275_v18 }
 0xf95   : > { %4004 = vmatpush3.msra.mxu1 %v2434_v56 }
 0xf96   : > { %4001 = vmatmul.mubr.msk.f32.vlgmr.msra.gmra.mrb[32].mxu0 %vm917_vm3, %v2815_v57  ;;  %4006 = vmatmul.mubr.msk.f32.vlgmr.msra.gmra.mrb[10].mxu1 %vm917_vm3, %v2816_v51 }
 0xf97   : > { %4010 = vmatprep.mubr.msk.f32.mxu0 %vm4276_vm2, %v4275_v18  ;;  %4013 = vmatprep.subr.bf16.mxu1 %v4275_v18 }
 0xf98   : > { %v2466_v35 = vpop.trf.xlu0  ;;  %4017 = vmatprep.mubr.msk.bf16.mxu1 %vm4276_vm2, %v4275_v18  ;;  %4014 = vmatpush3.bf16.msra.mxu1 %v4119_v2 }
 0xf99   : > { %4009 = vmatpush3.msra.mxu0 %v2466_v35  ;;  %4015 = vmatprep.subr.bf16.mxu1 %v4275_v18 }
 0xf9a   : > { %4011 = vmatmul.mubr.msk.f32.vlgmr.msra.gmra.mrb[34].mxu0 %vm917_vm3, %v2817_v52  ;;  %4021 = vmatprep.subr.bf16.mxu0 %v4275_v18 }
 0xf9b   : > { %4025 = vmatprep.mubr.msk.bf16.mxu0 %vm4276_vm2, %v4275_v18  ;;  %4022 = vmatpush3.bf16.msra.mxu0 %v4121_v19 }
 0xf9c   : > { %4016 = vmatpush3.bf16.msra.mxu1 %v4120_v3  ;;  %4023 = vmatprep.subr.bf16.mxu0 %v4275_v18 }
 0xf9d   : > { %4029 = vmatprep.subr.bf16.mxu1 %v4275_v18 }
0x1065   : > { %v2887_v53 = vpop.f32.mrb[30].mxu0 }
0x1066   : > { %3110 = vxpose.xlu0.b32.start.end [1/1] (short) (narrow) %v2887_v53, 8  ;;  %v3997_v58 = vpop.f32.mrb[31].mxu0 }
0x1069   : > { %v2960_v60 = vpop.f32.mrb[32].mxu0  ;;  %v3033_v61 = vpop.f32.mrb[10].mxu1 }
0x106a   : > { %3142 = vxpose.xlu0.b32.start.end [1/1] (short) (narrow) %v2960_v60, 8  ;;  %v4002_v62 = vpop.f32.mrb[33].mxu0  ;;  %v4007_v63 = vpop.f32.mrb[11].mxu1 }
0x106d   : > { %v3106_v0 = vpop.f32.mrb[34].mxu0 }
0x106e   : > { %3206 = vxpose.xlu1.b32.start.end [1/1] (short) (narrow) %v3106_v0, 8  ;;  %v4012_v1 = vpop.f32.mrb[35].mxu0  ;;  %3174 = vxpose.xlu0.b32.start.end [1/1] (short) (narrow) %v3033_v61, 8  ;;  %v3547_v61 = vstv %s3546_s12  ;;  %s4207_s12 = scalar_lea.vmem %s4801_s22, 16 }
0x106f   : > { %vm3548_vm8 = vcmp.eq.s32.totalorder %v4452_v24, %v3547_v61  ;;  %p4208_p7 = scmp.ne.s32.totalorder %s4801_s22, %s4207_s12  ;;  %p4215_p11 = scmp.lt.s32.totalorder %s4213_s11, %s4207_s12 }
0x1071   : > { %p4209_p8 = pnand %p4208_p7, %p4385_p1  ;;  %p4216_p12 = por %p4215_p11, %p4214_p10 }
0x1073   : > { %p4210_p9 = pneg %p4209_p8 }
0x1075   : > { %p4217_p13 = pnand %p4216_p12, %p4210_p9 }
0x10e6   : > { %v3126_v4 = vpop.trf.xlu0 }
0x10e7   : > { %3238 = vxpose.xlu0.b32.start [1/4] (short) (narrow) %v3126_v4, 8 }
0x10ea   : > { %v3158_v5 = vpop.trf.xlu0 }
0x10eb   : > { %3239 = vxpose.xlu0.b32.cont [2/4] (short) (narrow) %v3158_v5, 8 }
0x10ee   : > { %v3190_v6 = vpop.trf.xlu0  ;;  %v3222_v7 = vpop.trf.xlu1 }
0x10ef   : > { %3240 = vxpose.xlu0.b32.cont [3/4] (short) (narrow) %v3190_v6, 8 }
0x10f3   : > { %3241 = vxpose.xlu0.b32.end [4/4] (short) (narrow) %v3222_v7, 8 }
0x1167   : > { %v3254_v8 = vpop.trf.xlu0 }
0x1168   : > { %v3270_v11 = vpack.c.bf16 %v3254_v8, %v3254_v8 }
0x116a   : > { %4018 = vmatmul.mubr.msk.bf16.vlgmr.msra.gmra.mrb[16].mxu1 %vm412_vm1, %v3270_v11 }
0x116b   : > { %4045 = vmatprep.mubr.msk.bf16.mxu1 %vm4276_vm2, %v4275_v18  ;;  %4030 = vmatpush3.bf16.msra.mxu1 %v4123_v44 }
0x116c   : > { %4031 = vmatprep.subr.bf16.mxu1 %v4275_v18 }
0x116f   : > { %4032 = vmatpush3.bf16.msra.mxu1 %v4124_v42 }
0x1170   : > { %4033 = vmatprep.subr.bf16.mxu1 %v4275_v18 }
0x1173   : > { %4034 = vmatpush3.bf16.msra.mxu1 %v4125_v43 }
0x1174   : > { %4035 = vmatprep.subr.bf16.mxu1 %v4275_v18 }
0x1177   : > { %4036 = vmatpush3.bf16.msra.mxu1 %v4126_v45 }
0x1178   : > { %4037 = vmatprep.subr.bf16.mxu1 %v4275_v18 }
0x117b   : > { %4038 = vmatpush3.bf16.msra.mxu1 %v4127_v46 }
0x117c   : > { %4039 = vmatprep.subr.bf16.mxu1 %v4275_v18 }
0x117f   : > { %4040 = vmatpush3.bf16.msra.mxu1 %v4128_v25 }
0x1180   : > { %4041 = vmatprep.subr.bf16.mxu1 %v4275_v18 }
0x1183   : > { %4042 = vmatpush3.bf16.msra.mxu1 %v4129_v47 }
0x1184   : > { %4043 = vmatprep.subr.bf16.mxu1 %v4275_v18 }
0x1187   : > { %4044 = vmatpush3.bf16.msra.mxu1 %v4130_v48 }
0x123d   : > { %v3329_v14 = vpop.f32.mrb[16].mxu1 }
0x123e   : > { %v3330_v15 = vadd.f32 %v3329_v14, %v3279_v12  ;;  %v4019_v16 = vpop.f32.mrb[17].mxu1 }
0x123f   : > { %v3332_v20 = vpop.f32.mrb[18].mxu1 }
0x1240   : > { %v4714_v21 = vadd.f32 %v3330_v15, %v4624_v17  ;;  %v4020_v23 = vpop.f32.mrb[19].mxu1  ;;  %v4122_v17 = vld [vmem:[%s4849_s8 + $0x18] sm:$0xff]  }
0x1241   : > { %4024 = vmatpush3.bf16.msra.mxu0 %v4122_v17  ;;  %v4132_v23 = vld [vmem:[%s4851_s10 + $0x8] sm:$0xff]  }
0x1242   : > { %v3336_v22 = vsel %vm412_vm1, %v4714_v21, 0.0  ;;  %4049 = vmatprep.subr.bf16.mxu0 %v4275_v18 }
0x1243   : > { %3337 = vadd.xlane.f32.xlu1 %v3336_v22 }
0x12d0   : > { %v3338_v28 = vpop.xlane.xlu1 %3337 }
0x12d1   : > { %v3339_v30 = vmul.f32 0.03125, %v3338_v28 }
0x12d3   : > { %v3340_v31 = vsub.f32 %v4714_v21, %v3339_v30 }
0x12d5   : > { %v3341_v26 = vmul.f32 %v3340_v31, %v3340_v31 }
0x12d7   : > { %v3342_v29 = vsel %vm412_vm1, %v3341_v26, 0.0  ;;  %v3802_v26 = vld [vmem:[%s4846_s5 + $0x10] sm:$0x1] }
0x12d8   : > { %3343 = vadd.xlane.f32.xlu0 %v3342_v29 }
0x1365   : > { %v3344_v32 = vpop.xlane.xlu0 %3343 }
0x1366   : > { %v3345_v33 = vmul.f32 0.03125, %v3344_v32 }
0x1368   : > { %v3346_v34 = vadd.f32 1e-05, %v3345_v33 }
0x136a   : > { %4175 = vrsqrt.f32 %v3346_v34 }
0x1374   : > { %v4176_v38 = vpop.eup %4175 }
0x1375   : > { %v3348_v10 = vmul.f32 %v4176_v38, %v3340_v31 }
0x1377   : > { %v3353_v39 = vmul.f32 %v3352_v37, %v3348_v10 }
0x1379   : > { %v3358_v40 = vadd.f32 %v3357_v13, %v3353_v39 }
0x137b   : > { %v3359_v41 = vpack.c.bf16 %v3358_v40, %v3358_v40 }
0x137d   : > { %4026 = vmatmul.mubr.msk.bf16.vlgmr.msra.gmra.mrb[36].mxu0 %vm412_vm1, %v3359_v41 }
0x137e   : > { %4053 = vmatprep.mubr.msk.bf16.mxu0 %vm4276_vm2, %v4275_v18 }
0x1450   : > { %v3418_v27 = vpop.f32.mrb[36].mxu0 }
0x1451   : > { %v3419_v54 = vadd.f32 %v3418_v27, %v3368_v49  ;;  %v4027_v55 = vpop.f32.mrb[37].mxu0 }
0x1452   : > { %v3421_v56 = vpop.f32.mrb[38].mxu0 }
0x1453   : > { %v3777_v57 = vmul.f32 -1.702, %v3419_v54  ;;  %v4028_v51 = vpop.f32.mrb[39].mxu0 }
0x1455   : > { %v3426_v50 = vmul.f32 1.442695, %v3777_v57 }
0x1457   : > { %4177 = vpow2.f32 %v3426_v50 }
0x1461   : > { %v4178_v35 = vpop.eup %4177 }
0x1462   : > { %v3428_v52 = vadd.f32 1.0, %v4178_v35 }
0x1464   : > { %4179 = vrcp.f32 %v3428_v52 }
0x146e   : > { %v4180_v53 = vpop.eup %4179 }
0x146f   : > { %v3431_v58 = vmul.f32 %v4180_v53, %v3419_v54 }
0x1471   : > { %v3432_v60 = vpack.c.bf16 %v3431_v58, %v3431_v58 }
0x1473   : > { %4046 = vmatmul.mubr.bf16.vlgmr.msra.gmra.mrb[20].mxu1 %v3432_v60 }
0x1546   : > { %v3536_v62 = vpop.f32.mrb[20].mxu1 }
0x1547   : > { %v3537_v63 = vadd.f32 %v3536_v62, %v3453_v59  ;;  %v4047_v0 = vpop.f32.mrb[21].mxu1 }
0x1548   : > { %v3539_v1 = vpop.f32.mrb[22].mxu1 }
0x1549   : > { %v3542_v2 = vadd.f32 %v3537_v63, %v4714_v21  ;;  %v4048_v3 = vpop.f32.mrb[23].mxu1  ;;  %v4131_v21 = vld [vmem:[%s4851_s10] sm:$0xff]  }
0x154a   : > { %4050 = vmatpush3.bf16.msra.mxu0 %v4131_v21 }
0x154b   : > { %v3551_v4 = vsel %vm3548_vm8, %v3542_v2, 0.0  ;;  %4051 = vmatprep.subr.bf16.mxu0 %v4275_v18  ;;  %v3803_v18 = vld [vmem:[%s4846_s5 + $0x11] sm:$0x1] }
0x154c   : > { %v3552_v5 = vsel %vm412_vm1, %v3551_v4, 0.0 }
0x154d   : > { %v3553_v6 = vrot.slane %v3552_v5, 4 }
0x154e   : > { %4052 = vmatpush3.bf16.msra.mxu0 %v4132_v23 }
0x154f   : > { %v3554_v7 = vadd.f32 %v3553_v6, %v3552_v5 }
0x1551   : > { %v3555_v8 = vrot.slane %v3554_v7, 2 }
0x1553   : > { %v3556_v11 = vadd.f32 %v3555_v8, %v3554_v7 }
0x1555   : > { %v3557_v12 = vrot.slane %v3556_v11, 1 }
0x1557   : > { %v3558_v14 = vadd.f32 %v3557_v12, %v3556_v11 }
0x1559   : > { %v3559_v9 = vsel %vm412_vm1, %v3558_v14, 0.0 }
0x155a   : > { %3560 = vadd.xlane.f32.xlu1 %v3559_v9 }
0x15e7   : > { %v3561_v36 = vpop.xlane.xlu1 %3560 }
0x15e8   : > { %v3562_v15 = vmul.f32 0.03125, %v3561_v36 }
0x15ea   : > { %v3563_v16 = vsub.f32 %v3558_v14, %v3562_v15 }
0x15ec   : > { %v3564_v24 = vmul.f32 %v3563_v16, %v3563_v16 }
0x15ee   : > { %v3565_v20 = vsel %vm412_vm1, %v3564_v24, 0.0 }
0x15ef   : > { %3566 = vadd.xlane.f32.xlu1 %v3565_v20 }
0x167c   : > { %v3567_v22 = vpop.xlane.xlu1 %3566 }
0x167d   : > { %v3568_v28 = vmul.f32 0.03125, %v3567_v22 }
0x167f   : > { %v3569_v30 = vadd.f32 1e-05, %v3568_v28 }
0x1681   : > { %4181 = vrsqrt.f32 %v3569_v30 }
0x168b   : > { %v4182_v31 = vpop.eup %4181 }
0x168c   : > { %v3571_v29 = vmul.f32 %v4182_v31, %v3563_v16 }
0x168e   : > { %v3572_v19 = vmul.f32 %v3802_v26, %v3571_v29 }
0x1690   : > { %v3573_v17 = vadd.f32 %v3803_v18, %v3572_v19 }
0x1692   : > { %v3574_v32 = vpack.c.bf16 %v3573_v17, %v3573_v17 }
0x1694   : > { %4054 = vmatmul.mubr.msk.bf16.vlgmr.msra.gmra.mrb[40].mxu0 %vm412_vm1, %v3574_v32 }
0x1767   : > { %v3628_v33 = vpop.f32.mrb[40].mxu0 }
0x1768   : > { %3634 = vst.msk [vmem:[%s332_s20] sm:$0x1] %vm341_vm0, %v3628_v33  ;;  %v4055_v34 = vpop.f32.mrb[41].mxu0 }
0x1769   : > { %v3631_v37 = vpop.f32.mrb[42].mxu0 }
0x176a   : > { %4220 = shalt.err (!%p4217_p13)
}
0x176b   : > { %s4221_s28 = scalar_lea.hbm %s4799_s13, 16  ;;  %s4225_s18 = scalar_lea.hbm %s4875_s0, 32 }
0x176c   : > { %p4222_p0 = scmp.ne.s32.totalorder %s4799_s13, %s4221_s28  ;;  %p4226_p5 = scmp.lt.u32.totalorder %s4799_s13, %s4875_s0 }
0x176d   : > { %p4227_p6 = scmp.lt.u32.totalorder %s4225_s18, %s4221_s28  ;;  %p4229_p8 = scmp.lt.u32.totalorder %s4221_s28, %s4799_s13 }
0x176e   : > { %p4223_p3 = pnand %p4222_p0, %p4385_p1 }
0x176f   : > { %p4228_p7 = por %p4227_p6, %p4226_p5 }
0x1770   : > { %p4224_p4 = pneg %p4223_p3 }
0x1771   : > { %p4230_p9 = por %p4229_p8, %p4228_p7 }
0x1773   : > { %p4231_p10 = pnand %p4230_p9, %p4224_p4 }
0x1775   : > { %4234 = shalt.err (!%p4231_p10)
}
0x1776   : > { %4057 = dma.vmem_to_hbm [thread:$0]  (%p4385_p1), %s4801_s22, 16, %s4799_s13, %s3636_s27   ;;  %v4056_v38 = vpop.f32.mrb[43].mxu0 }
0x1777 PF: > { %s4876_s25 = sld [smem:[#allocation12_spill]]  ;;  %s4877_s30 = sld [smem:[#allocation10_spill]] }
0x177d   : > { %p4063_p11 = scmp.ge.s32.totalorder %s4876_s25, 2  ;;  %s3660_s14 = sand.u32 1, %s4877_s30  }
0x177e   : > { %s3661_s24 = scalar_lea.sflag [#allocation7], %s3660_s14 }
0x177f   : > { %p4060_p12 = pnand %p4063_p11, %p4389_p2 }
0x1781   : > { %4254 = dma.done.wait (!%p4060_p12), %s3661_s24, 16  }
0x1782   : > { %4256 = vsyncadd (!%p4060_p12), %s3661_s24, 4294967280  ;;  %s4879_s28 = sld [smem:[#allocation13_spill]]  ;;  %s4880_s12 = sld [smem:[#allocation11_spill]] }
0x1783   : > { %s4881_s27 = sld [smem:[#allocation14_spill]]  ;;  %s4882_s1 = smov %s4263_s26 }
0x1788   : > { %p31_p13 = scmp.ge.s32.totalorder %s4879_s28, 4   ;;  %s4883_s26 = smov %s4880_s12 }
0x178a   :  { %33 = sbr.rel (!%p31_p13) target bundleno = 29 (0x1d), region = 105 }
0x1791   :  { %3665 = vsyncpa [#allocation7], 1 }
0x1792   :  { %3667 = vsyncpa [#allocation7 + $0x1], 1 }

</bundles_post_ra>
